<compile_context>
chip_gen: v7x
topology: tpu7x:2x2x1
jax: 0.10.0
libtpu: 0.0.40
codegen_flags: <defaults>
</compile_context>

<pallas_src>
import jax
import jax.numpy as jnp
from jax.experimental import pallas as pl
from jax.experimental.pallas import tpu as pltpu


_N_OUT = 3      # 3-way NLI logits
_LANE = 128     # lane-dense output width


# ---------------------------------------------------------------------------
# helpers (pure jnp; shared by the kernel and the pure-JAX reference)
# ---------------------------------------------------------------------------
def _mlp2(x, w1, b1, w2, b2):
    """mlp(num_inputs, num_hiddens, flatten=False) in eval mode:
       Dropout -> Linear -> ReLU -> Dropout -> Linear -> ReLU."""
    h = jnp.maximum(jnp.dot(x, w1, preferred_element_type=jnp.float32) + b1, 0.0)
    h = jnp.maximum(jnp.dot(h.astype(w2.dtype), w2,
                            preferred_element_type=jnp.float32) + b2, 0.0)
    return h


def _softmax(x, axis):
    """In-kernel softmax: exp on EUP, reciprocal on EUP (approx), no divide."""
    m = jnp.max(x, axis=axis, keepdims=True)
    ex = jnp.exp(x - m)
    s = jnp.sum(ex, axis=axis, keepdims=True)
    return ex * pl.reciprocal(s, approx=True)


# ---------------------------------------------------------------------------
# Pallas kernel: one grid step == one tile of NB batch elements
# ---------------------------------------------------------------------------
def decomp_attn_kernel(a_ref, b_ref,
                       fw1, fb1, fw2, fb2,            # Attend.f
                       gw1a, gw1b, gb1, gw2, gb2,     # Compare.g (split first layer)
                       hw1a, hw1b, hb1, hw2, hb2,     # Aggregate.h (split first layer)
                       lw, lb,                        # Aggregate.linear (lane-padded)
                       out_ref):
    f32 = jnp.float32
    A = a_ref[...]            # (nb, La, E)
    Bm = b_ref[...]           # (nb, Lb, E)
    nb, la, e_dim = A.shape
    lbn = Bm.shape[1]
    cd = A.dtype              # matmul compute dtype (f32, or bf16 on v6e/v7x)

    # Load every weight/bias once into locals (single VMEM read each).
    w_f1, b_f1, w_f2, b_f2 = fw1[...], fb1[...], fw2[...], fb2[...]
    w_g1a, w_g1b, b_g1 = gw1a[...], gw1b[...], gb1[...]
    w_g2, b_g2 = gw2[...], gb2[...]
    w_h1a, w_h1b, b_h1 = hw1a[...], hw1b[...], hb1[...]
    w_h2, b_h2 = hw2[...], hb2[...]
    w_l, b_l = lw[...], lb[...]
    hdim = w_f2.shape[1]

    # ----- Attend: one token-wise MLP over the row-stacked [A; B] tokens -----
    A2 = A.reshape(nb * la, e_dim)
    B2 = Bm.reshape(nb * lbn, e_dim)
    AB = jnp.concatenate([A2, B2], axis=0)                      # (nb*(la+lbn), E)
    fAB = _mlp2(AB, w_f1, b_f1, w_f2, b_f2)                     # (rows, H), f32
    f_A = fAB[: nb * la].astype(cd).reshape(nb, la, hdim)
    f_B = fAB[nb * la:].astype(cd).reshape(nb, lbn, hdim)

    # attention scores per example (f32 accumulation on the MXU)
    e = jnp.einsum("bik,bjk->bij", f_A, f_B,
                   preferred_element_type=f32)                  # (nb, la, lbn)

    # Row softmax (over j) -> beta; column softmax (over i) -> alpha.
    # Column path reduces over axis=-2 and contracts over that axis directly,
    # so e.T is never materialized.
    p_row = _softmax(e, axis=-1)
    p_col = _softmax(e, axis=-2)
    beta = jnp.einsum("bij,bjd->bid", p_row.astype(cd), Bm,
                      preferred_element_type=f32)               # (nb, la, E)
    alpha = jnp.einsum("bij,bid->bjd", p_col.astype(cd), A,
                       preferred_element_type=f32)              # (nb, lbn, E)

    # ----- Compare: split-weight matmuls instead of lane-axis concat -----
    ba = jnp.concatenate([beta.reshape(nb * la, e_dim),
                          alpha.reshape(nb * lbn, e_dim)], axis=0).astype(cd)
    h1 = jnp.maximum(jnp.dot(AB, w_g1a, preferred_element_type=f32)
                     + jnp.dot(ba, w_g1b, preferred_element_type=f32) + b_g1, 0.0)
    vAB = jnp.maximum(jnp.dot(h1.astype(cd), w_g2,
                              preferred_element_type=f32) + b_g2, 0.0)
    V_A = vAB[: nb * la].reshape(nb, la, hdim)
    V_B = vAB[nb * la:].reshape(nb, lbn, hdim)

    # ----- Aggregate -----
    v_a = jnp.sum(V_A, axis=1)                                  # (nb, H)
    v_b = jnp.sum(V_B, axis=1)                                  # (nb, H)
    h = jnp.maximum(jnp.dot(v_a.astype(cd), w_h1a, preferred_element_type=f32)
                    + jnp.dot(v_b.astype(cd), w_h1b, preferred_element_type=f32)
                    + b_h1, 0.0)
    h = jnp.maximum(jnp.dot(h.astype(cd), w_h2,
                            preferred_element_type=f32) + b_h2, 0.0)
    # Lane-dense (nb, 128) store; real logits live in columns [:3].
    y = jnp.dot(h.astype(cd), w_l, preferred_element_type=f32) + b_l
    out_ref[...] = y.astype(out_ref.dtype)


# ---------------------------------------------------------------------------
# wrapper
# ---------------------------------------------------------------------------
def decomposable_attention(premises, hypothesis, params, *,
                           batch_tile=8, compute_dtype=jnp.float32):
    """Full forward pass. Embedding gather is host-side glue; everything else
    (Attend MLP -> attention -> softmax -> Compare MLP -> sum -> Aggregate MLP
    -> final linear) runs inside one Pallas kernel, gridded over batch tiles."""
    f32 = jnp.float32
    emb = params["embedding"]
    # TODO(synk): move the embedding gather in-kernel (scalar-prefetch the token
    # ids and DMA embedding rows) to avoid the (B, L, E) HBM round-trip.
    A = emb[premises].astype(compute_dtype)       # (B, La, E)
    Bm = emb[hypothesis].astype(compute_dtype)    # (B, Lb, E)
    batch, La, E = A.shape
    Lb = Bm.shape[1]
    H = params["fw2"].shape[1]

    # Batch tile: multiple of 8 (sublane alignment of the (nb, 128) out block).
    nb = max(8, -(-int(batch_tile) // 8) * 8)
    batch_pad = -(-batch // nb) * nb
    pad = batch_pad - batch
    if pad:
        A = jnp.pad(A, ((0, pad), (0, 0), (0, 0)))
        Bm = jnp.pad(Bm, ((0, pad), (0, 0), (0, 0)))

    cast = lambda w: w.astype(compute_dtype)

    # Split the first-layer weights of Compare.g / Aggregate.h so the kernel can
    # replace lane-axis concatenation with two matmuls + add.
    gw1 = params["gw1"]           # (2E, H)
    hw1 = params["hw1"]           # (2H, H)
    # Pad the final linear to 128 output lanes for lane-dense stores.
    lw_pad = jnp.zeros((H, _LANE), f32).at[:, :_N_OUT].set(params["lw"])
    lb_pad = jnp.zeros((1, _LANE), f32).at[:, :_N_OUT].set(params["lb"])

    weights = (
        cast(params["fw1"]), params["fb1"].astype(f32),
        cast(params["fw2"]), params["fb2"].astype(f32),
        cast(gw1[:E]), cast(gw1[E:]), params["gb1"].astype(f32),
        cast(params["gw2"]), params["gb2"].astype(f32),
        cast(hw1[:H]), cast(hw1[H:]), params["hb1"].astype(f32),
        cast(params["hw2"]), params["hb2"].astype(f32),
        cast(lw_pad), lb_pad,
    )
    # All weights are 2-D; block index is constant across the grid, so Pallas
    # keeps them resident in VMEM (no per-step re-DMA).
    w_specs = [pl.BlockSpec(w.shape, lambda b: (0, 0)) for w in weights]

    out = pl.pallas_call(
        decomp_attn_kernel,
        out_shape=jax.ShapeDtypeStruct((batch_pad, _LANE), f32),
        grid=(batch_pad // nb,),
        in_specs=[pl.BlockSpec((nb, La, E), lambda b: (b, 0, 0)),
                  pl.BlockSpec((nb, Lb, E), lambda b: (b, 0, 0))] + w_specs,
        out_specs=pl.BlockSpec((nb, _LANE), lambda b: (b, 0)),
        compiler_params=pltpu.CompilerParams(
            dimension_semantics=("parallel",)),
    )(A, Bm, *weights)
    return out[:batch, :_N_OUT]


# ---------------------------------------------------------------------------
# pure-JAX reference (exact f32, for the correctness check)
# ---------------------------------------------------------------------------
def reference(premises, hypothesis, p):
    A = p["embedding"][premises]
    Bm = p["embedding"][hypothesis]
    f_A = _mlp2(A,  p["fw1"], p["fb1"], p["fw2"], p["fb2"])
    f_B = _mlp2(Bm, p["fw1"], p["fb1"], p["fw2"], p["fb2"])
    e = jnp.einsum("bik,bjk->bij", f_A, f_B)
    beta = jnp.einsum("bij,bjd->bid", jax.nn.softmax(e, axis=-1), Bm)
    alpha = jnp.einsum("bji,bjd->bid", jax.nn.softmax(e, axis=1), A)
    V_A = _mlp2(jnp.concatenate([A, beta], axis=-1),
                p["gw1"], p["gb1"], p["gw2"], p["gb2"])
    V_B = _mlp2(jnp.concatenate([Bm, alpha], axis=-1),
                p["gw1"], p["gb1"], p["gw2"], p["gb2"])
    v = jnp.concatenate([V_A.sum(axis=1), V_B.sum(axis=1)], axis=-1)
    h = _mlp2(v, p["hw1"], p["hb1"], p["hw2"], p["hb2"])
    return h @ p["lw"] + p["lb"]


# ---------------------------------------------------------------------------
def make_params(vocab, embed_size, num_hiddens):
    ks = jax.random.split(jax.random.PRNGKey(1), 16)
    f32 = jnp.float32
    s = 0.1
    return {
        "embedding": jax.random.normal(ks[0], (vocab, embed_size), f32) * 0.5,
        # Attend.f : embed -> H -> H
        "fw1": jax.random.normal(ks[1], (embed_size, num_hiddens), f32) * s,
        "fb1": jax.random.normal(ks[2], (1, num_hiddens), f32) * s,
        "fw2": jax.random.normal(ks[3], (num_hiddens, num_hiddens), f32) * s,
        "fb2": jax.random.normal(ks[4], (1, num_hiddens), f32) * s,
        # Compare.g : 2*embed -> H -> H
        "gw1": jax.random.normal(ks[5], (2 * embed_size, num_hiddens), f32) * s,
        "gb1": jax.random.normal(ks[6], (1, num_hiddens), f32) * s,
        "gw2": jax.random.normal(ks[7], (num_hiddens, num_hiddens), f32) * s,
        "gb2": jax.random.normal(ks[8], (1, num_hiddens), f32) * s,
        # Aggregate.h : 2*H -> H -> H
        "hw1": jax.random.normal(ks[9], (2 * num_hiddens, num_hiddens), f32) * s,
        "hb1": jax.random.normal(ks[10], (1, num_hiddens), f32) * s,
        "hw2": jax.random.normal(ks[11], (num_hiddens, num_hiddens), f32) * s,
        "hb2": jax.random.normal(ks[12], (1, num_hiddens), f32) * s,
        # Aggregate.linear : H -> 3
        "lw": jax.random.normal(ks[13], (num_hiddens, 3), f32) * s,
        "lb": jax.random.normal(ks[14], (1, 3), f32) * s,
    }


if __name__ == "__main__":
    vocab, embed_size, num_hiddens = 50, 32, 32
    batch, seq = 2, 8

    key = jax.random.PRNGKey(0)
    k_p, k_h = jax.random.split(key)
    premises = jax.random.randint(k_p, (batch, seq), 0, vocab, dtype=jnp.int32)
    hypothesis = jax.random.randint(k_h, (batch, seq), 0, vocab, dtype=jnp.int32)

    params = make_params(vocab, embed_size, num_hiddens)

    # f32 compute keeps exact module semantics; pass compute_dtype=jnp.bfloat16
    # on v6e/v7x for the faster MXU path (f32 accumulation retained).
    y = decomposable_attention(premises, hypothesis, params)
    y = jax.block_until_ready(y)

    y_ref = reference(premises, hypothesis, params)
    assert y.shape == (batch, 3), y.shape
    # approx=True softmax reciprocal introduces a tiny (<1e-3) relative error
    # vs. the exact-division reference.
    assert jnp.allclose(y, y_ref, rtol=1e-2, atol=1e-2), (y, y_ref)

    print("KERNEL_OK")
</pallas_src>

<mosaic_0001>
module attributes {stable_mosaic.version = 11 : i64} {
  func.func @decomp_attn_kernel(%arg0: i32, %arg1: memref<8x8x32xf32, #tpu.memory_space<vmem>>, %arg2: memref<8x8x32xf32, #tpu.memory_space<vmem>>, %arg3: memref<32x32xf32, #tpu.memory_space<vmem>>, %arg4: memref<1x32xf32, #tpu.memory_space<vmem>>, %arg5: memref<32x32xf32, #tpu.memory_space<vmem>>, %arg6: memref<1x32xf32, #tpu.memory_space<vmem>>, %arg7: memref<32x32xf32, #tpu.memory_space<vmem>>, %arg8: memref<32x32xf32, #tpu.memory_space<vmem>>, %arg9: memref<1x32xf32, #tpu.memory_space<vmem>>, %arg10: memref<32x32xf32, #tpu.memory_space<vmem>>, %arg11: memref<1x32xf32, #tpu.memory_space<vmem>>, %arg12: memref<32x32xf32, #tpu.memory_space<vmem>>, %arg13: memref<32x32xf32, #tpu.memory_space<vmem>>, %arg14: memref<1x32xf32, #tpu.memory_space<vmem>>, %arg15: memref<32x32xf32, #tpu.memory_space<vmem>>, %arg16: memref<1x32xf32, #tpu.memory_space<vmem>>, %arg17: memref<32x128xf32, #tpu.memory_space<vmem>>, %arg18: memref<1x128xf32, #tpu.memory_space<vmem>>, %arg19: memref<8x128xf32, #tpu.memory_space<vmem>>) attributes {dimension_semantics = [#tpu.dimension_semantics<parallel>], iteration_bounds = array<i64: 1>, scalar_prefetch = 0 : i64, scratch_operands = 0 : i64, tpu.core_type = #tpu.core_type<tc>, window_params = [{transform_indices = @transform_0, window_bounds = array<i64: 8, 8, 32>}, {transform_indices = @transform_1, window_bounds = array<i64: 8, 8, 32>}, {pipeline_mode = #tpu.pipeline_mode<synchronous>, transform_indices = @transform_2, window_bounds = array<i64: 32, 32>}, {pipeline_mode = #tpu.pipeline_mode<synchronous>, transform_indices = @transform_3, window_bounds = array<i64: 1, 32>}, {pipeline_mode = #tpu.pipeline_mode<synchronous>, transform_indices = @transform_4, window_bounds = array<i64: 32, 32>}, {pipeline_mode = #tpu.pipeline_mode<synchronous>, transform_indices = @transform_5, window_bounds = array<i64: 1, 32>}, {pipeline_mode = #tpu.pipeline_mode<synchronous>, transform_indices = @transform_6, window_bounds = array<i64: 32, 32>}, {pipeline_mode = #tpu.pipeline_mode<synchronous>, transform_indices = @transform_7, window_bounds = array<i64: 32, 32>}, {pipeline_mode = #tpu.pipeline_mode<synchronous>, transform_indices = @transform_8, window_bounds = array<i64: 1, 32>}, {pipeline_mode = #tpu.pipeline_mode<synchronous>, transform_indices = @transform_9, window_bounds = array<i64: 32, 32>}, {pipeline_mode = #tpu.pipeline_mode<synchronous>, transform_indices = @transform_10, window_bounds = array<i64: 1, 32>}, {pipeline_mode = #tpu.pipeline_mode<synchronous>, transform_indices = @transform_11, window_bounds = array<i64: 32, 32>}, {pipeline_mode = #tpu.pipeline_mode<synchronous>, transform_indices = @transform_12, window_bounds = array<i64: 32, 32>}, {pipeline_mode = #tpu.pipeline_mode<synchronous>, transform_indices = @transform_13, window_bounds = array<i64: 1, 32>}, {pipeline_mode = #tpu.pipeline_mode<synchronous>, transform_indices = @transform_14, window_bounds = array<i64: 32, 32>}, {pipeline_mode = #tpu.pipeline_mode<synchronous>, transform_indices = @transform_15, window_bounds = array<i64: 1, 32>}, {pipeline_mode = #tpu.pipeline_mode<synchronous>, transform_indices = @transform_16, window_bounds = array<i64: 32, 128>}, {pipeline_mode = #tpu.pipeline_mode<synchronous>, transform_indices = @transform_17, window_bounds = array<i64: 1, 128>}, {transform_indices = @transform_18, window_bounds = array<i64: 8, 128>}]} {
    %c0 = arith.constant 0 : index
    %c0_0 = arith.constant 0 : index
    %c0_1 = arith.constant 0 : index
    %0 = vector.load %arg1[%c0, %c0_0, %c0_1] : memref<8x8x32xf32, #tpu.memory_space<vmem>>, vector<8x8x32xf32>
    %c0_2 = arith.constant 0 : index
    %c0_3 = arith.constant 0 : index
    %c0_4 = arith.constant 0 : index
    %1 = vector.load %arg2[%c0_2, %c0_3, %c0_4] : memref<8x8x32xf32, #tpu.memory_space<vmem>>, vector<8x8x32xf32>
    %c0_5 = arith.constant 0 : index
    %c0_6 = arith.constant 0 : index
    %2 = vector.load %arg3[%c0_5, %c0_6] : memref<32x32xf32, #tpu.memory_space<vmem>>, vector<32x32xf32>
    %c0_7 = arith.constant 0 : index
    %c0_8 = arith.constant 0 : index
    %3 = vector.load %arg4[%c0_7, %c0_8] : memref<1x32xf32, #tpu.memory_space<vmem>>, vector<1x32xf32>
    %c0_9 = arith.constant 0 : index
    %c0_10 = arith.constant 0 : index
    %4 = vector.load %arg5[%c0_9, %c0_10] : memref<32x32xf32, #tpu.memory_space<vmem>>, vector<32x32xf32>
    %c0_11 = arith.constant 0 : index
    %c0_12 = arith.constant 0 : index
    %5 = vector.load %arg6[%c0_11, %c0_12] : memref<1x32xf32, #tpu.memory_space<vmem>>, vector<1x32xf32>
    %c0_13 = arith.constant 0 : index
    %c0_14 = arith.constant 0 : index
    %6 = vector.load %arg7[%c0_13, %c0_14] : memref<32x32xf32, #tpu.memory_space<vmem>>, vector<32x32xf32>
    %c0_15 = arith.constant 0 : index
    %c0_16 = arith.constant 0 : index
    %7 = vector.load %arg8[%c0_15, %c0_16] : memref<32x32xf32, #tpu.memory_space<vmem>>, vector<32x32xf32>
    %c0_17 = arith.constant 0 : index
    %c0_18 = arith.constant 0 : index
    %8 = vector.load %arg9[%c0_17, %c0_18] : memref<1x32xf32, #tpu.memory_space<vmem>>, vector<1x32xf32>
    %c0_19 = arith.constant 0 : index
    %c0_20 = arith.constant 0 : index
    %9 = vector.load %arg10[%c0_19, %c0_20] : memref<32x32xf32, #tpu.memory_space<vmem>>, vector<32x32xf32>
    %c0_21 = arith.constant 0 : index
    %c0_22 = arith.constant 0 : index
    %10 = vector.load %arg11[%c0_21, %c0_22] : memref<1x32xf32, #tpu.memory_space<vmem>>, vector<1x32xf32>
    %c0_23 = arith.constant 0 : index
    %c0_24 = arith.constant 0 : index
    %11 = vector.load %arg12[%c0_23, %c0_24] : memref<32x32xf32, #tpu.memory_space<vmem>>, vector<32x32xf32>
    %c0_25 = arith.constant 0 : index
    %c0_26 = arith.constant 0 : index
    %12 = vector.load %arg13[%c0_25, %c0_26] : memref<32x32xf32, #tpu.memory_space<vmem>>, vector<32x32xf32>
    %c0_27 = arith.constant 0 : index
    %c0_28 = arith.constant 0 : index
    %13 = vector.load %arg14[%c0_27, %c0_28] : memref<1x32xf32, #tpu.memory_space<vmem>>, vector<1x32xf32>
    %c0_29 = arith.constant 0 : index
    %c0_30 = arith.constant 0 : index
    %14 = vector.load %arg15[%c0_29, %c0_30] : memref<32x32xf32, #tpu.memory_space<vmem>>, vector<32x32xf32>
    %c0_31 = arith.constant 0 : index
    %c0_32 = arith.constant 0 : index
    %15 = vector.load %arg16[%c0_31, %c0_32] : memref<1x32xf32, #tpu.memory_space<vmem>>, vector<1x32xf32>
    %c0_33 = arith.constant 0 : index
    %c0_34 = arith.constant 0 : index
    %16 = vector.load %arg17[%c0_33, %c0_34] : memref<32x128xf32, #tpu.memory_space<vmem>>, vector<32x128xf32>
    %c0_35 = arith.constant 0 : index
    %c0_36 = arith.constant 0 : index
    %17 = vector.load %arg18[%c0_35, %c0_36] : memref<1x128xf32, #tpu.memory_space<vmem>>, vector<1x128xf32>
    %18 = vector.shape_cast %0 : vector<8x8x32xf32> to vector<64x32xf32>
    %19 = vector.shape_cast %1 : vector<8x8x32xf32> to vector<64x32xf32>
    %20 = tpu.concatenate %18, %19 in 0 : vector<64x32xf32>, vector<64x32xf32> -> vector<128x32xf32>
    %cst = arith.constant dense<0.000000e+00> : vector<128x32xf32>
    %21 = tpu.matmul %20, %2, %cst {dimension_numbers = #tpu.dot_dimension_numbers<[1], [0], [0], [1], [0, 0, 1, 1], [], []>} : vector<128x32xf32>, vector<32x32xf32>, vector<128x32xf32> -> vector<128x32xf32>
    %22 = vector.broadcast %3 : vector<1x32xf32> to vector<128x32xf32>
    %23 = arith.addf %21, %22 : vector<128x32xf32>
    %cst_37 = arith.constant 0.000000e+00 : f32
    %24 = vector.broadcast %cst_37 : f32 to vector<128x32xf32>
    %25 = arith.maximumf %23, %24 : vector<128x32xf32>
    %cst_38 = arith.constant dense<0.000000e+00> : vector<128x32xf32>
    %26 = tpu.matmul %25, %4, %cst_38 {dimension_numbers = #tpu.dot_dimension_numbers<[1], [0], [0], [1], [0, 0, 1, 1], [], []>} : vector<128x32xf32>, vector<32x32xf32>, vector<128x32xf32> -> vector<128x32xf32>
    %27 = vector.broadcast %5 : vector<1x32xf32> to vector<128x32xf32>
    %28 = arith.addf %26, %27 : vector<128x32xf32>
    %cst_39 = arith.constant 0.000000e+00 : f32
    %29 = vector.broadcast %cst_39 : f32 to vector<128x32xf32>
    %30 = arith.maximumf %28, %29 : vector<128x32xf32>
    %31 = vector.extract_strided_slice %30 {offsets = [0, 0], sizes = [64, 32], strides = [1, 1]} : vector<128x32xf32> to vector<64x32xf32>
    %32 = vector.shape_cast %31 : vector<64x32xf32> to vector<8x8x32xf32>
    %33 = vector.extract_strided_slice %30 {offsets = [64, 0], sizes = [64, 32], strides = [1, 1]} : vector<128x32xf32> to vector<64x32xf32>
    %34 = vector.shape_cast %33 : vector<64x32xf32> to vector<8x8x32xf32>
    "tpu.trace_start"() <{level = 10 : i32, message = "bik,bjk->bij"}> : () -> ()
    %cst_40 = arith.constant dense<0.000000e+00> : vector<8x8x8xf32>
    %35 = tpu.matmul %32, %34, %cst_40 {dimension_numbers = #tpu.dot_dimension_numbers<[2], [2], [1], [1], [0, 0, 0, 1, 1, 1], [0], [0]>} : vector<8x8x32xf32>, vector<8x8x32xf32>, vector<8x8x8xf32> -> vector<8x8x8xf32>
    "tpu.trace_stop"() : () -> ()
    %cst_41 = arith.constant dense<0xFF800000> : vector<8x8xf32>
    %36 = vector.multi_reduction <maximumf>, %35, %cst_41 [2] : vector<8x8x8xf32> to vector<8x8xf32>
    %37 = vector.shape_cast %36 : vector<8x8xf32> to vector<8x8x1xf32>
    %38 = vector.broadcast %37 : vector<8x8x1xf32> to vector<8x8x8xf32>
    %39 = arith.subf %35, %38 : vector<8x8x8xf32>
    %40 = math.exp %39 : vector<8x8x8xf32>
    %cst_42 = arith.constant dense<0.000000e+00> : vector<8x8xf32>
    %41 = vector.multi_reduction <add>, %40, %cst_42 [2] : vector<8x8x8xf32> to vector<8x8xf32>
    %42 = vector.shape_cast %41 : vector<8x8xf32> to vector<8x8x1xf32>
    %43 = tpu.reciprocal %42 {approx = true} : vector<8x8x1xf32> -> vector<8x8x1xf32>
    %44 = vector.broadcast %43 : vector<8x8x1xf32> to vector<8x8x8xf32>
    %45 = arith.mulf %40, %44 : vector<8x8x8xf32>
    %cst_43 = arith.constant dense<0xFF800000> : vector<8x8xf32>
    %46 = vector.multi_reduction <maximumf>, %35, %cst_43 [1] : vector<8x8x8xf32> to vector<8x8xf32>
    %47 = vector.shape_cast %46 : vector<8x8xf32> to vector<8x1x8xf32>
    %48 = vector.broadcast %47 : vector<8x1x8xf32> to vector<8x8x8xf32>
    %49 = arith.subf %35, %48 : vector<8x8x8xf32>
    %50 = math.exp %49 : vector<8x8x8xf32>
    %cst_44 = arith.constant dense<0.000000e+00> : vector<8x8xf32>
    %51 = vector.multi_reduction <add>, %50, %cst_44 [1] : vector<8x8x8xf32> to vector<8x8xf32>
    %52 = vector.shape_cast %51 : vector<8x8xf32> to vector<8x1x8xf32>
    %53 = tpu.reciprocal %52 {approx = true} : vector<8x1x8xf32> -> vector<8x1x8xf32>
    %54 = vector.broadcast %53 : vector<8x1x8xf32> to vector<8x8x8xf32>
    %55 = arith.mulf %50, %54 : vector<8x8x8xf32>
    "tpu.trace_start"() <{level = 10 : i32, message = "bij,bjd->bid"}> : () -> ()
    %cst_45 = arith.constant dense<0.000000e+00> : vector<8x8x32xf32>
    %56 = tpu.matmul %45, %1, %cst_45 {dimension_numbers = #tpu.dot_dimension_numbers<[2], [1], [1], [2], [0, 0, 0, 1, 1, 2], [0], [0]>} : vector<8x8x8xf32>, vector<8x8x32xf32>, vector<8x8x32xf32> -> vector<8x8x32xf32>
    "tpu.trace_stop"() : () -> ()
    "tpu.trace_start"() <{level = 10 : i32, message = "bij,bid->bjd"}> : () -> ()
    %cst_46 = arith.constant dense<0.000000e+00> : vector<8x8x32xf32>
    %57 = tpu.matmul %55, %0, %cst_46 {dimension_numbers = #tpu.dot_dimension_numbers<[1], [1], [2], [2], [0, 0, 0, 2, 1, 2], [0], [0]>} : vector<8x8x8xf32>, vector<8x8x32xf32>, vector<8x8x32xf32> -> vector<8x8x32xf32>
    "tpu.trace_stop"() : () -> ()
    %58 = vector.shape_cast %56 : vector<8x8x32xf32> to vector<64x32xf32>
    %59 = vector.shape_cast %57 : vector<8x8x32xf32> to vector<64x32xf32>
    %60 = tpu.concatenate %58, %59 in 0 : vector<64x32xf32>, vector<64x32xf32> -> vector<128x32xf32>
    %cst_47 = arith.constant dense<0.000000e+00> : vector<128x32xf32>
    %61 = tpu.matmul %20, %6, %cst_47 {dimension_numbers = #tpu.dot_dimension_numbers<[1], [0], [0], [1], [0, 0, 1, 1], [], []>} : vector<128x32xf32>, vector<32x32xf32>, vector<128x32xf32> -> vector<128x32xf32>
    %cst_48 = arith.constant dense<0.000000e+00> : vector<128x32xf32>
    %62 = tpu.matmul %60, %7, %cst_48 {dimension_numbers = #tpu.dot_dimension_numbers<[1], [0], [0], [1], [0, 0, 1, 1], [], []>} : vector<128x32xf32>, vector<32x32xf32>, vector<128x32xf32> -> vector<128x32xf32>
    %63 = arith.addf %61, %62 : vector<128x32xf32>
    %64 = vector.broadcast %8 : vector<1x32xf32> to vector<128x32xf32>
    %65 = arith.addf %63, %64 : vector<128x32xf32>
    %cst_49 = arith.constant 0.000000e+00 : f32
    %66 = vector.broadcast %cst_49 : f32 to vector<128x32xf32>
    %67 = arith.maximumf %65, %66 : vector<128x32xf32>
    %cst_50 = arith.constant dense<0.000000e+00> : vector<128x32xf32>
    %68 = tpu.matmul %67, %9, %cst_50 {dimension_numbers = #tpu.dot_dimension_numbers<[1], [0], [0], [1], [0, 0, 1, 1], [], []>} : vector<128x32xf32>, vector<32x32xf32>, vector<128x32xf32> -> vector<128x32xf32>
    %69 = vector.broadcast %10 : vector<1x32xf32> to vector<128x32xf32>
    %70 = arith.addf %68, %69 : vector<128x32xf32>
    %cst_51 = arith.constant 0.000000e+00 : f32
    %71 = vector.broadcast %cst_51 : f32 to vector<128x32xf32>
    %72 = arith.maximumf %70, %71 : vector<128x32xf32>
    %73 = vector.extract_strided_slice %72 {offsets = [0, 0], sizes = [64, 32], strides = [1, 1]} : vector<128x32xf32> to vector<64x32xf32>
    %74 = vector.shape_cast %73 : vector<64x32xf32> to vector<8x8x32xf32>
    %75 = vector.extract_strided_slice %72 {offsets = [64, 0], sizes = [64, 32], strides = [1, 1]} : vector<128x32xf32> to vector<64x32xf32>
    %76 = vector.shape_cast %75 : vector<64x32xf32> to vector<8x8x32xf32>
    %cst_52 = arith.constant dense<0.000000e+00> : vector<8x32xf32>
    %77 = vector.multi_reduction <add>, %74, %cst_52 [1] : vector<8x8x32xf32> to vector<8x32xf32>
    %cst_53 = arith.constant dense<0.000000e+00> : vector<8x32xf32>
    %78 = vector.multi_reduction <add>, %76, %cst_53 [1] : vector<8x8x32xf32> to vector<8x32xf32>
    %cst_54 = arith.constant dense<0.000000e+00> : vector<8x32xf32>
    %79 = tpu.matmul %77, %11, %cst_54 {dimension_numbers = #tpu.dot_dimension_numbers<[1], [0], [0], [1], [0, 0, 1, 1], [], []>} : vector<8x32xf32>, vector<32x32xf32>, vector<8x32xf32> -> vector<8x32xf32>
    %cst_55 = arith.constant dense<0.000000e+00> : vector<8x32xf32>
    %80 = tpu.matmul %78, %12, %cst_55 {dimension_numbers = #tpu.dot_dimension_numbers<[1], [0], [0], [1], [0, 0, 1, 1], [], []>} : vector<8x32xf32>, vector<32x32xf32>, vector<8x32xf32> -> vector<8x32xf32>
    %81 = arith.addf %79, %80 : vector<8x32xf32>
    %82 = vector.broadcast %13 : vector<1x32xf32> to vector<8x32xf32>
    %83 = arith.addf %81, %82 : vector<8x32xf32>
    %cst_56 = arith.constant 0.000000e+00 : f32
    %84 = vector.broadcast %cst_56 : f32 to vector<8x32xf32>
    %85 = arith.maximumf %83, %84 : vector<8x32xf32>
    %cst_57 = arith.constant dense<0.000000e+00> : vector<8x32xf32>
    %86 = tpu.matmul %85, %14, %cst_57 {dimension_numbers = #tpu.dot_dimension_numbers<[1], [0], [0], [1], [0, 0, 1, 1], [], []>} : vector<8x32xf32>, vector<32x32xf32>, vector<8x32xf32> -> vector<8x32xf32>
    %87 = vector.broadcast %15 : vector<1x32xf32> to vector<8x32xf32>
    %88 = arith.addf %86, %87 : vector<8x32xf32>
    %cst_58 = arith.constant 0.000000e+00 : f32
    %89 = vector.broadcast %cst_58 : f32 to vector<8x32xf32>
    %90 = arith.maximumf %88, %89 : vector<8x32xf32>
    %cst_59 = arith.constant dense<0.000000e+00> : vector<8x128xf32>
    %91 = tpu.matmul %90, %16, %cst_59 {dimension_numbers = #tpu.dot_dimension_numbers<[1], [0], [0], [1], [0, 0, 1, 1], [], []>} : vector<8x32xf32>, vector<32x128xf32>, vector<8x128xf32> -> vector<8x128xf32>
    %92 = vector.broadcast %17 : vector<1x128xf32> to vector<8x128xf32>
    %93 = arith.addf %91, %92 : vector<8x128xf32>
    %c0_60 = arith.constant 0 : index
    %c0_61 = arith.constant 0 : index
    %94 = vector.load %arg19[%c0_60, %c0_61] : memref<8x128xf32, #tpu.memory_space<vmem>>, vector<8x128xf32>
    tpu.vector_store %arg19[%c0_60, %c0_61], %93 {strides = array<i32>} : memref<8x128xf32, #tpu.memory_space<vmem>>, vector<8x128xf32>,
    return
  }
  func.func @transform_0(%arg0: i32) -> (i32, i32, i32) {
    %c0_i32 = arith.constant 0 : i32
    %c0_i32_0 = arith.constant 0 : i32
    %c0_i32_1 = arith.constant 0 : i32
    return %arg0, %c0_i32, %c0_i32_0 : i32, i32, i32
  }
  func.func @transform_1(%arg0: i32) -> (i32, i32, i32) {
    %c0_i32 = arith.constant 0 : i32
    %c0_i32_0 = arith.constant 0 : i32
    %c0_i32_1 = arith.constant 0 : i32
    return %arg0, %c0_i32, %c0_i32_0 : i32, i32, i32
  }
  func.func @transform_2(%arg0: i32) -> (i32, i32) {
    %c0_i32 = arith.constant 0 : i32
    %c0_i32_0 = arith.constant 0 : i32
    %c0_i32_1 = arith.constant 0 : i32
    return %c0_i32, %c0_i32_0 : i32, i32
  }
  func.func @transform_3(%arg0: i32) -> (i32, i32) {
    %c0_i32 = arith.constant 0 : i32
    %c0_i32_0 = arith.constant 0 : i32
    %c0_i32_1 = arith.constant 0 : i32
    return %c0_i32, %c0_i32_0 : i32, i32
  }
  func.func @transform_4(%arg0: i32) -> (i32, i32) {
    %c0_i32 = arith.constant 0 : i32
    %c0_i32_0 = arith.constant 0 : i32
    %c0_i32_1 = arith.constant 0 : i32
    return %c0_i32, %c0_i32_0 : i32, i32
  }
  func.func @transform_5(%arg0: i32) -> (i32, i32) {
    %c0_i32 = arith.constant 0 : i32
    %c0_i32_0 = arith.constant 0 : i32
    %c0_i32_1 = arith.constant 0 : i32
    return %c0_i32, %c0_i32_0 : i32, i32
  }
  func.func @transform_6(%arg0: i32) -> (i32, i32) {
    %c0_i32 = arith.constant 0 : i32
    %c0_i32_0 = arith.constant 0 : i32
    %c0_i32_1 = arith.constant 0 : i32
    return %c0_i32, %c0_i32_0 : i32, i32
  }
  func.func @transform_7(%arg0: i32) -> (i32, i32) {
    %c0_i32 = arith.constant 0 : i32
    %c0_i32_0 = arith.constant 0 : i32
    %c0_i32_1 = arith.constant 0 : i32
    return %c0_i32, %c0_i32_0 : i32, i32
  }
  func.func @transform_8(%arg0: i32) -> (i32, i32) {
    %c0_i32 = arith.constant 0 : i32
    %c0_i32_0 = arith.constant 0 : i32
    %c0_i32_1 = arith.constant 0 : i32
    return %c0_i32, %c0_i32_0 : i32, i32
  }
  func.func @transform_9(%arg0: i32) -> (i32, i32) {
    %c0_i32 = arith.constant 0 : i32
    %c0_i32_0 = arith.constant 0 : i32
    %c0_i32_1 = arith.constant 0 : i32
    return %c0_i32, %c0_i32_0 : i32, i32
  }
  func.func @transform_10(%arg0: i32) -> (i32, i32) {
    %c0_i32 = arith.constant 0 : i32
    %c0_i32_0 = arith.constant 0 : i32
    %c0_i32_1 = arith.constant 0 : i32
    return %c0_i32, %c0_i32_0 : i32, i32
  }
  func.func @transform_11(%arg0: i32) -> (i32, i32) {
    %c0_i32 = arith.constant 0 : i32
    %c0_i32_0 = arith.constant 0 : i32
    %c0_i32_1 = arith.constant 0 : i32
    return %c0_i32, %c0_i32_0 : i32, i32
  }
  func.func @transform_12(%arg0: i32) -> (i32, i32) {
    %c0_i32 = arith.constant 0 : i32
    %c0_i32_0 = arith.constant 0 : i32
    %c0_i32_1 = arith.constant 0 : i32
    return %c0_i32, %c0_i32_0 : i32, i32
  }
  func.func @transform_13(%arg0: i32) -> (i32, i32) {
    %c0_i32 = arith.constant 0 : i32
    %c0_i32_0 = arith.constant 0 : i32
    %c0_i32_1 = arith.constant 0 : i32
    return %c0_i32, %c0_i32_0 : i32, i32
  }
  func.func @transform_14(%arg0: i32) -> (i32, i32) {
    %c0_i32 = arith.constant 0 : i32
    %c0_i32_0 = arith.constant 0 : i32
    %c0_i32_1 = arith.constant 0 : i32
    return %c0_i32, %c0_i32_0 : i32, i32
  }
  func.func @transform_15(%arg0: i32) -> (i32, i32) {
    %c0_i32 = arith.constant 0 : i32
    %c0_i32_0 = arith.constant 0 : i32
    %c0_i32_1 = arith.constant 0 : i32
    return %c0_i32, %c0_i32_0 : i32, i32
  }
  func.func @transform_16(%arg0: i32) -> (i32, i32) {
    %c0_i32 = arith.constant 0 : i32
    %c0_i32_0 = arith.constant 0 : i32
    %c0_i32_1 = arith.constant 0 : i32
    return %c0_i32, %c0_i32_0 : i32, i32
  }
  func.func @transform_17(%arg0: i32) -> (i32, i32) {
    %c0_i32 = arith.constant 0 : i32
    %c0_i32_0 = arith.constant 0 : i32
    %c0_i32_1 = arith.constant 0 : i32
    return %c0_i32, %c0_i32_0 : i32, i32
  }
  func.func @transform_18(%arg0: i32) -> (i32, i32) {
    %c0_i32 = arith.constant 0 : i32
    %c0_i32_0 = arith.constant 0 : i32
    return %arg0, %c0_i32 : i32, i32
  }
}

</mosaic_0001>

<bundles_post_ra>
// kernel: tpu_custom_call.1
= control target key start
LH: loop header
LB: loop body
LE: loop exit
PB: predicated region body
PF: predicated region fallthrough
CT: control target
= control target key end

     0   :  { %s5949_s0 = inlined_call_operand.hbm [shape: f32[8,8,32], index: 0, kind: input, shape index: {}]   ;;  %s5950_s1 = inlined_call_operand.hbm [shape: f32[8,8,32], index: 1, kind: input, shape index: {}]   ;;  %s5951_s2 = inlined_call_operand.hbm [shape: f32[32,32], index: 2, kind: input, shape index: {}]   ;;  %s5952_s3 = inlined_call_operand.vmem [shape: f32[1,32], index: 3, kind: input, shape index: {}]   ;;  %s5953_s4 = inlined_call_operand.hbm [shape: f32[32,32], index: 4, kind: input, shape index: {}]   ;;  %s5954_s5 = inlined_call_operand.vmem [shape: f32[1,32], index: 5, kind: input, shape index: {}]   ;;  %s5955_s6 = inlined_call_operand.hbm [shape: f32[32,32], index: 6, kind: input, shape index: {}]   ;;  %s5956_s7 = inlined_call_operand.hbm [shape: f32[32,32], index: 7, kind: input, shape index: {}]   ;;  %s5957_s8 = inlined_call_operand.hbm [shape: f32[1,32], index: 8, kind: input, shape index: {}]   ;;  %s5958_s9 = inlined_call_operand.vmem [shape: f32[32,32], index: 9, kind: input, shape index: {}]   ;;  %s5959_s10 = inlined_call_operand.vmem [shape: f32[1,32], index: 10, kind: input, shape index: {}]   ;;  %s5960_s11 = inlined_call_operand.hbm [shape: f32[32,32], index: 11, kind: input, shape index: {}]   ;;  %s5961_s12 = inlined_call_operand.hbm [shape: f32[32,32], index: 12, kind: input, shape index: {}]   ;;  %s5962_s13 = inlined_call_operand.vmem [shape: f32[1,32], index: 13, kind: input, shape index: {}]   ;;  %s5963_s14 = inlined_call_operand.hbm [shape: f32[32,32], index: 14, kind: input, shape index: {}]   ;;  %s5964_s15 = inlined_call_operand.vmem [shape: f32[1,32], index: 15, kind: input, shape index: {}]   ;;  %s5965_s16 = inlined_call_operand.hbm [shape: f32[32,128], index: 16, kind: input, shape index: {}]   ;;  %s5966_s17 = inlined_call_operand.vmem [shape: f32[1,128], index: 17, kind: input, shape index: {}]   ;;  %s5967_s18 = inlined_call_operand.hbm [shape: f32[8,128], index: 18, kind: output, shape index: {}]  }
   0x1   :  { %5972 = sst [smem:[#allocation28_spill]] %s5949_s0 }
   0x2   :  { %5973 = sst [smem:[#allocation29_spill]] %s5950_s1 }
   0x3   :  { %5974 = sst [smem:[#allocation30_spill]] %s5951_s2 }
   0x4   :  { %5975 = sst [smem:[#allocation31_spill]] %s5967_s18 }
   0x5   :  { %23 = vsyncpa [#allocation3], 0 }
   0x6   :  { %24 = vsyncpa [#allocation6], 0 }
   0x7   :  { %25 = vsyncpa [#allocation9], 0 }
   0x8   :  { %26 = vsyncpa [#allocation12], 0 }
   0x9   :  { %27 = vsyncpa [#allocation15], 0 }
   0xa   :  { %28 = vsyncpa [#allocation18], 0 }
   0xb   :  { %29 = vsyncpa [#allocation4], 0  ;;  %s5104_s27 = smov [#allocation5]   ;;  %s5105_s29 = smov [#allocation8]  }
   0xc   :  { %s47_s28 = sshll.u32 %s5104_s27, 4  ;;  %s73_s30 = sshll.u32 %s5105_s29, 4  ;;  %s48_s28 = int_to_ptr.vmem [resolvable:$true] %s47_s28  ;;  %s5216_s30 = int_to_ptr.vmem [resolvable:$true] %s73_s30 }
   0xd   :  { %s5976_s1 = sld [smem:[#allocation29_spill]] }
  0x13   :  { %s4826_s20 = scalar_lea.hbm %s5976_s1, 1024 }
  0x14   :  { %p4827_p0 = scmp.ne.s32.totalorder %s5976_s1, %s4826_s20  ;;  %p4830_p1 = scmp.lt.u32.totalorder %s4826_s20, %s5976_s1 }
  0x16   :  { %p4832_p2 = pnand %p4830_p1, %p4827_p0 }
  0x18   :  { %4835 = shalt.err (!%p4832_p2)
}
  0x19   :  { %s4836_s24 = scalar_lea.vmem %s48_s28, 1024  ;;  %p4841_p4 = scmp.lt.s32.totalorder %s48_s28, %s48_s28 }
  0x1a   :  { %p4837_p3 = scmp.ne.s32.totalorder %s48_s28, %s4836_s24  ;;  %p4842_p5 = scmp.lt.s32.totalorder %s4836_s24, %s4836_s24 }
  0x1c   :  { %p4843_p6 = por %p4842_p5, %p4841_p4 }
  0x1e   :  { %p4844_p7 = pnand %p4843_p6, %p4837_p3 }
  0x20   :  { %4847 = shalt.err (!%p4844_p7)
}
  0x21   :  { %s5106_s25 = smov 128   ;;  %s5107_s26 = smov 8  }
  0x22   :  { %53 = dma.hbm_to_vmem [thread:$0]  %s5976_s1, 1024, %s48_s28, [#allocation6], %s5106_s25, %s5106_s25, %s5107_s26  }
  0x23   :  { %s4848_s20 = scalar_lea.hbm %s5953_s4, 512 }
  0x24   :  { %p4849_p8 = scmp.ne.s32.totalorder %s5953_s4, %s4848_s20  ;;  %p4852_p9 = scmp.lt.u32.totalorder %s4848_s20, %s5953_s4 }
  0x26   :  { %p4854_p10 = pnand %p4852_p9, %p4849_p8 }
  0x28   :  { %4857 = shalt.err (!%p4854_p10)
}
  0x29   :  { %s4858_s24 = scalar_lea.vmem %s5216_s30, 512  ;;  %p4863_p12 = scmp.lt.s32.totalorder %s5216_s30, %s5216_s30 }
  0x2a   :  { %p4859_p11 = scmp.ne.s32.totalorder %s5216_s30, %s4858_s24  ;;  %p4864_p13 = scmp.lt.s32.totalorder %s4858_s24, %s4858_s24 }
  0x2c   :  { %p4865_p0 = por %p4864_p13, %p4863_p12 }
  0x2e   :  { %p4866_p1 = pnand %p4865_p0, %p4859_p11 }
  0x30   :  { %4869 = shalt.err (!%p4866_p1)
}
  0x31   :  { %79 = dma.hbm_to_vmem [thread:$0]  %s5953_s4, 512, %s5216_s30, [#allocation9], %s5106_s25, %s5106_s25, %s5107_s26  }
  0x32   :  { %s5108_s27 = smov [#allocation11]   ;;  %s5109_s0 = smov [#allocation14]  }
  0x33   :  { %s99_s29 = sshll.u32 %s5108_s27, 4  ;;  %s125_s19 = sshll.u32 %s5109_s0, 4  ;;  %s100_s29 = int_to_ptr.vmem [resolvable:$true] %s99_s29  ;;  %s5253_s19 = int_to_ptr.vmem [resolvable:$true] %s125_s19 }
  0x34   :  { %s4870_s22 = scalar_lea.hbm %s5956_s7, 512 }
  0x35   :  { %p4871_p2 = scmp.ne.s32.totalorder %s5956_s7, %s4870_s22  ;;  %p4874_p3 = scmp.lt.u32.totalorder %s4870_s22, %s5956_s7 }
  0x37   :  { %p4876_p4 = pnand %p4874_p3, %p4871_p2 }
  0x39   :  { %4879 = shalt.err (!%p4876_p4)
}
  0x3a   :  { %s4880_s4 = scalar_lea.vmem %s100_s29, 512  ;;  %p4885_p6 = scmp.lt.s32.totalorder %s100_s29, %s100_s29 }
  0x3b   :  { %p4881_p5 = scmp.ne.s32.totalorder %s100_s29, %s4880_s4  ;;  %p4886_p7 = scmp.lt.s32.totalorder %s4880_s4, %s4880_s4 }
  0x3d   :  { %p4887_p8 = por %p4886_p7, %p4885_p6 }
  0x3f   :  { %p4888_p9 = pnand %p4887_p8, %p4881_p5 }
  0x41   :  { %4891 = shalt.err (!%p4888_p9)
}
  0x42   :  { %105 = dma.hbm_to_vmem [thread:$0]  %s5956_s7, 512, %s100_s29, [#allocation12], %s5106_s25, %s5106_s25, %s5107_s26  }
  0x43   :  { %s4892_s18 = scalar_lea.hbm %s5960_s11, 512 }
  0x44   :  { %p4893_p10 = scmp.ne.s32.totalorder %s5960_s11, %s4892_s18  ;;  %p4896_p11 = scmp.lt.u32.totalorder %s4892_s18, %s5960_s11 }
  0x46   :  { %p4898_p12 = pnand %p4896_p11, %p4893_p10 }
  0x48   :  { %4901 = shalt.err (!%p4898_p12)
}
  0x49   :  { %s4902_s2 = scalar_lea.vmem %s5253_s19, 512  ;;  %p4907_p0 = scmp.lt.s32.totalorder %s5253_s19, %s5253_s19 }
  0x4a   :  { %p4903_p13 = scmp.ne.s32.totalorder %s5253_s19, %s4902_s2  ;;  %p4908_p1 = scmp.lt.s32.totalorder %s4902_s2, %s4902_s2 }
  0x4c   :  { %p4909_p2 = por %p4908_p1, %p4907_p0 }
  0x4e   :  { %p4910_p3 = pnand %p4909_p2, %p4903_p13 }
  0x50   :  { %4913 = shalt.err (!%p4910_p3)
}
  0x51   :  { %131 = dma.hbm_to_vmem [thread:$0]  %s5960_s11, 512, %s5253_s19, [#allocation15], %s5106_s25, %s5106_s25, %s5107_s26  }
  0x52   :  { %s5110_s23 = smov [#allocation17]   ;;  %s5111_s4 = smov [#allocation2]  }
  0x53   :  { %s151_s24 = sshll.u32 %s5110_s23, 4  ;;  %s35_s30 = sshll.u32 %s5111_s4, 4  ;;  %s152_s24 = int_to_ptr.vmem [resolvable:$true] %s151_s24  ;;  %s5290_s30 = int_to_ptr.vmem [resolvable:$true] %s35_s30 }
  0x54   :  { %s4914_s27 = scalar_lea.hbm %s5963_s14, 512 }
  0x55   :  { %p4915_p4 = scmp.ne.s32.totalorder %s5963_s14, %s4914_s27  ;;  %p4918_p5 = scmp.lt.u32.totalorder %s4914_s27, %s5963_s14 }
  0x57   :  { %p4920_p6 = pnand %p4918_p5, %p4915_p4 }
  0x59   :  { %4923 = shalt.err (!%p4920_p6)
}
  0x5a   :  { %s4924_s11 = scalar_lea.vmem %s152_s24, 512  ;;  %p4929_p8 = scmp.lt.s32.totalorder %s152_s24, %s152_s24 }
  0x5b   :  { %p4925_p7 = scmp.ne.s32.totalorder %s152_s24, %s4924_s11  ;;  %p4930_p9 = scmp.lt.s32.totalorder %s4924_s11, %s4924_s11 }
  0x5d   :  { %p4931_p10 = por %p4930_p9, %p4929_p8 }
  0x5f   :  { %p4932_p11 = pnand %p4931_p10, %p4925_p7 }
  0x61   :  { %4935 = shalt.err (!%p4932_p11)
}
  0x62   :  { %157 = dma.hbm_to_vmem [thread:$0]  %s5963_s14, 512, %s152_s24, [#allocation18], %s5106_s25, %s5106_s25, %s5107_s26  }
  0x63   :  { %s5977_s29 = sld [smem:[#allocation28_spill]] }
  0x69   :  { %s4936_s23 = scalar_lea.hbm %s5977_s29, 1024 }
  0x6a   :  { %p4937_p12 = scmp.ne.s32.totalorder %s5977_s29, %s4936_s23  ;;  %p4940_p13 = scmp.lt.u32.totalorder %s4936_s23, %s5977_s29 }
  0x6c   :  { %p4942_p0 = pnand %p4940_p13, %p4937_p12 }
  0x6e   :  { %4945 = shalt.err (!%p4942_p0)
}
  0x6f   :  { %s4946_s18 = scalar_lea.vmem %s5290_s30, 1024  ;;  %p4951_p2 = scmp.lt.s32.totalorder %s5290_s30, %s5290_s30 }
  0x70   :  { %p4947_p1 = scmp.ne.s32.totalorder %s5290_s30, %s4946_s18  ;;  %p4952_p3 = scmp.lt.s32.totalorder %s4946_s18, %s4946_s18 }
  0x72   :  { %p4953_p4 = por %p4952_p3, %p4951_p2 }
  0x74   :  { %p4954_p5 = pnand %p4953_p4, %p4947_p1 }
  0x76   :  { %4957 = shalt.err (!%p4954_p5)
}
  0x77   :  { %41 = dma.hbm_to_vmem [thread:$0]  %s5977_s29, 1024, %s5290_s30, [#allocation3], %s5106_s25, %s5106_s25, %s5107_s26  }
  0x78   :  { %s5112_s0 = smov [#allocation7]   ;;  %s5113_s21 = smov [#allocation10]  }
  0x79   :  { %s59_s20 = sshll.u32 %s5112_s0, 4  ;;  %s87_s11 = sshll.u32 %s5113_s21, 4  ;;  %s60_s20 = int_to_ptr.vmem [resolvable:$true] %s59_s20  ;;  %s5327_s11 = int_to_ptr.vmem [resolvable:$true] %s87_s11 }
  0x7a   :  { %s5978_s2 = sld [smem:[#allocation30_spill]] }
  0x80   :  { %s4958_s7 = scalar_lea.hbm %s5978_s2, 512 }
  0x81   :  { %p4959_p6 = scmp.ne.s32.totalorder %s5978_s2, %s4958_s7  ;;  %p4962_p7 = scmp.lt.u32.totalorder %s4958_s7, %s5978_s2 }
  0x83   :  { %p4964_p8 = pnand %p4962_p7, %p4959_p6 }
  0x85   :  { %4967 = shalt.err (!%p4964_p8)
}
  0x86   :  { %s4968_s30 = scalar_lea.vmem %s60_s20, 512  ;;  %p4973_p10 = scmp.lt.s32.totalorder %s60_s20, %s60_s20 }
  0x87   :  { %p4969_p9 = scmp.ne.s32.totalorder %s60_s20, %s4968_s30  ;;  %p4974_p11 = scmp.lt.s32.totalorder %s4968_s30, %s4968_s30 }
  0x89   :  { %p4975_p12 = por %p4974_p11, %p4973_p10 }
  0x8b   :  { %p4976_p13 = pnand %p4975_p12, %p4969_p9 }
  0x8d   :  { %4979 = shalt.err (!%p4976_p13)
}
  0x8e   :  { %65 = dma.hbm_to_vmem [thread:$0]  %s5978_s2, 512, %s60_s20, [#allocation6], %s5106_s25, %s5106_s25, %s5107_s26  }
  0x8f   :  { %s4980_s24 = scalar_lea.hbm %s5955_s6, 512 }
  0x90   :  { %p4981_p0 = scmp.ne.s32.totalorder %s5955_s6, %s4980_s24  ;;  %p4984_p1 = scmp.lt.u32.totalorder %s4980_s24, %s5955_s6 }
  0x92   :  { %p4986_p2 = pnand %p4984_p1, %p4981_p0 }
  0x94   :  { %4989 = shalt.err (!%p4986_p2)
}
  0x95   :  { %s4990_s7 = scalar_lea.vmem %s5327_s11, 512  ;;  %p4995_p4 = scmp.lt.s32.totalorder %s5327_s11, %s5327_s11 }
  0x96   :  { %p4991_p3 = scmp.ne.s32.totalorder %s5327_s11, %s4990_s7  ;;  %p4996_p5 = scmp.lt.s32.totalorder %s4990_s7, %s4990_s7 }
  0x98   :  { %p4997_p6 = por %p4996_p5, %p4995_p4 }
  0x9a   :  { %p4998_p7 = pnand %p4997_p6, %p4991_p3 }
  0x9c   :  { %5001 = shalt.err (!%p4998_p7)
}
  0x9d   :  { %93 = dma.hbm_to_vmem [thread:$0]  %s5955_s6, 512, %s5327_s11, [#allocation9], %s5106_s25, %s5106_s25, %s5107_s26  }
  0x9e   :  { %s5114_s23 = smov [#allocation13]   ;;  %s5115_s28 = smov [#allocation16]  }
  0x9f   :  { %s112_s4 = sshll.u32 %s5114_s23, 4  ;;  %s137_s1 = sshll.u32 %s5115_s28, 4  ;;  %s113_s4 = int_to_ptr.vmem [resolvable:$true] %s112_s4  ;;  %s5364_s1 = int_to_ptr.vmem [resolvable:$true] %s137_s1 }
  0xa0   :  { %s5002_s27 = scalar_lea.hbm %s5957_s8, 16 }
  0xa1   :  { %p5003_p8 = scmp.ne.s32.totalorder %s5957_s8, %s5002_s27  ;;  %p5006_p9 = scmp.lt.u32.totalorder %s5002_s27, %s5957_s8 }
  0xa3   :  { %p5008_p10 = pnand %p5006_p9, %p5003_p8 }
  0xa5   :  { %5011 = shalt.err (!%p5008_p10)
}
  0xa6   :  { %s5012_s6 = scalar_lea.vmem %s113_s4, 16  ;;  %s5016_s11 = scalar_lea.vmem %s113_s4, 32 }
  0xa7   :  { %p5013_p11 = scmp.ne.s32.totalorder %s113_s4, %s5012_s6  ;;  %p5017_p12 = scmp.lt.s32.totalorder %s113_s4, %s113_s4 }
  0xa8   :  { %p5018_p13 = scmp.lt.s32.totalorder %s5016_s11, %s5012_s6 }
  0xaa   :  { %p5019_p0 = por %p5018_p13, %p5017_p12 }
  0xac   :  { %p5020_p1 = pnand %p5019_p0, %p5013_p11 }
  0xae   :  { %5023 = shalt.err (!%p5020_p1)
}
  0xaf   :  { %115 = dma.hbm_to_vmem [thread:$0]  %s5957_s8, 16, %s113_s4, [#allocation12]  }
  0xb0   :  { %s5024_s20 = scalar_lea.hbm %s5961_s12, 512 }
  0xb1   :  { %p5025_p2 = scmp.ne.s32.totalorder %s5961_s12, %s5024_s20  ;;  %p5028_p3 = scmp.lt.u32.totalorder %s5024_s20, %s5961_s12 }
  0xb3   :  { %p5030_p4 = pnand %p5028_p3, %p5025_p2 }
  0xb5   :  { %5033 = shalt.err (!%p5030_p4)
}
  0xb6   :  { %s5034_s29 = scalar_lea.vmem %s5364_s1, 512  ;;  %p5039_p6 = scmp.lt.s32.totalorder %s5364_s1, %s5364_s1 }
  0xb7   :  { %p5035_p5 = scmp.ne.s32.totalorder %s5364_s1, %s5034_s29  ;;  %p5040_p7 = scmp.lt.s32.totalorder %s5034_s29, %s5034_s29 }
  0xb9   :  { %p5041_p8 = por %p5040_p7, %p5039_p6 }
  0xbb   :  { %p5042_p9 = pnand %p5041_p8, %p5035_p5 }
  0xbd   :  { %5045 = shalt.err (!%p5042_p9)
}
  0xbe   :  { %143 = dma.hbm_to_vmem [thread:$0]  %s5961_s12, 512, %s5364_s1, [#allocation15], %s5106_s25, %s5106_s25, %s5107_s26  }
  0xbf   :  { %s5116_s27 = smov [#allocation19]   ;;  %s5046_s0 = scalar_lea.hbm %s5965_s16, 512 }
  0xc0   :  { %s165_s18 = sshll.u32 %s5116_s27, 4  ;;  %p5047_p10 = scmp.ne.s32.totalorder %s5965_s16, %s5046_s0  ;;  %s166_s18 = int_to_ptr.vmem [resolvable:$true] %s165_s18 }
  0xc1   :  { %p5050_p11 = scmp.lt.u32.totalorder %s5046_s0, %s5965_s16 }
  0xc3   :  { %p5052_p12 = pnand %p5050_p11, %p5047_p10 }
  0xc5   :  { %5055 = shalt.err (!%p5052_p12)
}
  0xc6   :  { %s5056_s22 = scalar_lea.vmem %s166_s18, 512  ;;  %p5061_p0 = scmp.lt.s32.totalorder %s166_s18, %s166_s18 }
  0xc7   :  { %p5057_p13 = scmp.ne.s32.totalorder %s166_s18, %s5056_s22  ;;  %p5062_p1 = scmp.lt.s32.totalorder %s5056_s22, %s5056_s22 }
  0xc9   :  { %p5063_p2 = por %p5062_p1, %p5061_p0 }
  0xcb   :  { %p5064_p3 = pnand %p5063_p2, %p5057_p13 }
  0xcd   :  { %5067 = shalt.err (!%p5064_p3)
}
  0xce   :  { %171 = dma.hbm_to_vmem [thread:$0]  %s5965_s16, 512, %s166_s18, [#allocation18], %s5106_s25, %s5106_s25, %s5107_s26  }
  0xcf   :  { %5090 = dma.done.wait [#allocation3], 1024  }
  0xd0   :  { %5091 = vsyncadd [#allocation3], 4294966272 }
  0xd1   :  { %5092 = dma.done.wait [#allocation6], 1536  }
  0xd2   :  { %5093 = vsyncadd [#allocation6], 4294965760 }
  0xd3   :  { %5094 = dma.done.wait [#allocation9], 1024  }
  0xd4   :  { %5095 = vsyncadd [#allocation9], 4294966272 }
  0xd5   :  { %5096 = dma.done.wait [#allocation12], 528  }
  0xd6   :  { %5097 = vsyncadd [#allocation12], 4294966768 }
  0xd7   :  { %5098 = dma.done.wait [#allocation15], 1024  }
  0xd8   :  { %5099 = vsyncadd [#allocation15], 4294966272 }
  0xd9   :  { %5100 = dma.done.wait [#allocation18], 1024  }
  0xda   :  { %5101 = vsyncadd [#allocation18], 4294966272  ;;  %vm272_vm0 = vcmask 261120   ;;  %v223_v0 = vld [vmem:[#allocation7] sm:$0xff]  ;;  %v224_v1 = vld [vmem:[#allocation7 + $0x8] sm:$0xff]  ;;  %vm5118_vm1 = vmmov 0  }
  0xdb   :  { %v225_v2 = vld [vmem:[#allocation7 + $0x10] sm:$0xff]  ;;  %v4649_v3 = vpack.c.bf16 %v224_v1, %v223_v0  ;;  %v226_v4 = vld [vmem:[#allocation7 + $0x18] sm:$0xff]  ;;  %v207_v5 = vld [vmem:[#allocation2] sm:$0xff]  ;;  %vm1305_vm2 = vcmask 64512   ;;  %vm3673_vm3 = vcmask 1041409   ;;  %vm3675_vm4 = vcmask 1042434  }
  0xdc   :  { %v4653_v6 = vpack.c.bf16 %v226_v4, %v225_v2  ;;  %4333 = vmatprep.mubr.msk.f32.mxu0 %vm272_vm0, %v207_v5  ;;  %v228_v7 = vld [vmem:[#allocation8] sm:$0xff]  ;;  %v229_v8 = vld [vmem:[#allocation8 + $0x8] sm:$0xff]  ;;  %v209_v11 = vld [vmem:[#allocation2 + $0x10] sm:$0xff]  ;;  %vm3677_vm5 = vcmask 1043459   ;;  %vm3679_vm6 = vcmask 1044484   ;;  %vm3681_vm7 = vcmask 1045509  }
  0xdd   :  { %4650 = vmatprep.subr.bf16.mxu0 %v4649_v3  ;;  %v208_v9 = vld [vmem:[#allocation2 + $0x8] sm:$0xff]  ;;  %v4657_v10 = vpack.c.bf16 %v229_v8, %v228_v7  ;;  %v210_v12 = vld [vmem:[#allocation2 + $0x18] sm:$0xff]  ;;  %v211_v13 = vld [vmem:[#allocation2 + $0x20] sm:$0xff]  ;;  %vm3683_vm8 = vcmask 1046534   ;;  %vm3685_vm9 = vcmask 1047559   ;;  %s5120_s24 = smov [#allocation20]  }
  0xde   :  { %4652 = vmatpush3.bf16.msra.mxu0 %v4649_v3  ;;  %v212_v14 = vld [vmem:[#allocation2 + $0x28] sm:$0xff]  ;;  %v213_v15 = vld [vmem:[#allocation2 + $0x30] sm:$0xff]  ;;  %v214_v16 = vld [vmem:[#allocation2 + $0x38] sm:$0xff]  ;;  %s4020_s0 = sshll.u32 %s5120_s24, 4  ;;  %s4021_s0 = int_to_ptr.vmem [resolvable:$true] %s4020_s0 }
  0xdf   :  { %4654 = vmatprep.subr.bf16.mxu0 %v4653_v6  ;;  %4658 = vmatprep.subr.bf16.mxu1 %v4657_v10  ;;  %v5420_v17 = vld [vmem:[#allocation5] sm:$0xff]  ;;  %v5425_v18 = vld [vmem:[#allocation5 + $0x8] sm:$0xff]  ;;  %v5427_v19 = vld [vmem:[#allocation5 + $0x10] sm:$0xff]  ;;  %s5068_s6 = scalar_lea.vmem %s4021_s0, 128  ;;  %p5073_p5 = scmp.lt.s32.totalorder %s4021_s0, %s4021_s0 }
  0xe0   :  { %4660 = vmatpush3.bf16.msra.mxu1 %v4657_v10  ;;  %v5433_v20 = vld [vmem:[#allocation5 + $0x18] sm:$0xff]  ;;  %v5435_v21 = vld [vmem:[#allocation5 + $0x20] sm:$0xff]  ;;  %v5441_v22 = vld [vmem:[#allocation5 + $0x28] sm:$0xff]  ;;  %p5069_p4 = scmp.ne.s32.totalorder %s4021_s0, %s5068_s6  ;;  %p5074_p6 = scmp.lt.s32.totalorder %s5068_s6, %s5068_s6 }
  0xe1   :  { %v5443_v23 = vld [vmem:[#allocation5 + $0x30] sm:$0xff]  ;;  %v5449_v24 = vld [vmem:[#allocation5 + $0x38] sm:$0xff]  ;;  %v4034_v28 = vld [vmem:[%s5952_s3] ss:$0 sm:$0xff] }
  0xe2   :  { %4656 = vmatpush3.bf16.msra.mxu0 %v4653_v6  ;;  %v230_v25 = vld [vmem:[#allocation8 + $0x10] sm:$0xff]  ;;  %v231_v26 = vld [vmem:[#allocation8 + $0x18] sm:$0xff]  ;;  %p5075_p7 = por %p5074_p6, %p5073_p5 }
  0xe3   :  { %v4661_v27 = vpack.c.bf16 %v231_v26, %v230_v25 }
  0xe4   :  { %p5076_p8 = pnand %p5075_p7, %p5069_p4 }
  0xe5   :  { %4334 = vmatmul.mubr.msk.f32.vlgmr.msra.gmra.mrb[0].mxu0 %vm272_vm0, %v208_v9  ;;  %4662 = vmatprep.subr.bf16.mxu1 %v4661_v27 }
  0xe6   :  { %4336 = vmatprep.mubr.msk.f32.mxu0 %vm272_vm0, %v209_v11  ;;  %4664 = vmatpush3.bf16.msra.mxu1 %v4661_v27 }
  0xe9   :  { %4337 = vmatmul.mubr.msk.f32.gmra.mrb[2].mxu0 %vm272_vm0, %v210_v12 }
  0xea   :  { %4339 = vmatprep.mubr.msk.f32.mxu0 %vm272_vm0, %v211_v13  ;;  %v5117_v13 = vmov 0.0  }
  0xeb   :  { %4394 = vmatprep.subr.mxu1 %v5117_v13  ;;  %4389 = vmatprep.subr.mxu0 %v5117_v13 }
  0xed   :  { %4340 = vmatmul.mubr.msk.f32.gmra.mrb[4].mxu0 %vm272_vm0, %v212_v14 }
  0xee   :  { %4342 = vmatprep.mubr.msk.f32.mxu0 %vm272_vm0, %v213_v15 }
  0xf1   :  { %4343 = vmatmul.mubr.msk.f32.gmra.mrb[6].mxu0 %vm272_vm0, %v214_v16 }
  0xf2   :  { %4345 = vmatprep.mubr.msk.f32.mxu0 %vm272_vm0, %v5420_v17 }
  0xf5   :  { %4346 = vmatmul.mubr.msk.f32.gmra.mrb[8].mxu0 %vm272_vm0, %v5425_v18 }
  0xf6   :  { %4348 = vmatprep.mubr.msk.f32.mxu0 %vm272_vm0, %v5427_v19 }
  0xf9   :  { %4349 = vmatmul.mubr.msk.f32.gmra.mrb[10].mxu0 %vm272_vm0, %v5433_v20 }
  0xfa   :  { %4351 = vmatprep.mubr.msk.f32.mxu0 %vm272_vm0, %v5435_v21 }
  0xfd   :  { %4352 = vmatmul.mubr.msk.f32.gmra.mrb[12].mxu0 %vm272_vm0, %v5441_v22 }
  0xfe   :  { %4354 = vmatprep.mubr.msk.f32.mxu0 %vm272_vm0, %v5443_v23 }
 0x101   :  { %4355 = vmatmul.mubr.msk.f32.gmra.mrb[14].mxu0 %vm272_vm0, %v5449_v24 }
 0x102   :  { %4391 = vmatprep.mubr.msk.f32.mxu0 %vm5118_vm1, %v5117_v13 }
 0x1b8   :  { %v4335_v29 = vpop.f32.mrb[0].mxu0 }
 0x1b9   :  { %v393_v30 = vadd.f32 %v4335_v29, %v4034_v28  ;;  %v387_v31 = vpop.f32.mrb[1].mxu0 }
 0x1ba   :  { %v388_v32 = vadd.f32 %v4034_v28, %v387_v31 }
 0x1bb   :  { %v467_v35 = vmax.f32 %v393_v30, 0.0  ;;  %v4051_v30 = vld [vmem:[%s5954_s5] ss:$0 sm:$0xff] }
 0x1bc   :  { %v466_v33 = vmax.f32 %v388_v32, 0.0  ;;  %v4338_v34 = vpop.f32.mrb[2].mxu0 }
 0x1bd   :  { %v403_v36 = vadd.f32 %v4338_v34, %v4034_v28  ;;  %v397_v37 = vpop.f32.mrb[3].mxu0 }
 0x1be   :  { %v398_v38 = vadd.f32 %v4034_v28, %v397_v37  ;;  %4365 = vmatprep.mubr.msk.f32.mxu1 %vm272_vm0, %v466_v33 }
 0x1bf   :  { %4366 = vmatmul.mubr.msk.f32.vlgmr.msra.gmra.mrb[0].mxu1 %vm272_vm0, %v467_v35  ;;  %v469_v41 = vmax.f32 %v403_v36, 0.0 }
 0x1c0   :  { %v468_v39 = vmax.f32 %v398_v38, 0.0  ;;  %v4341_v40 = vpop.f32.mrb[4].mxu0 }
 0x1c1   :  { %v413_v42 = vadd.f32 %v4341_v40, %v4034_v28  ;;  %v407_v43 = vpop.f32.mrb[5].mxu0 }
 0x1c2   :  { %v408_v44 = vadd.f32 %v4034_v28, %v407_v43  ;;  %4368 = vmatprep.mubr.msk.f32.mxu1 %vm272_vm0, %v468_v39 }
 0x1c3   :  { %4369 = vmatmul.mubr.msk.f32.gmra.mrb[2].mxu1 %vm272_vm0, %v469_v41  ;;  %v471_v47 = vmax.f32 %v413_v42, 0.0 }
 0x1c4   :  { %v470_v45 = vmax.f32 %v408_v44, 0.0  ;;  %v4344_v46 = vpop.f32.mrb[6].mxu0 }
 0x1c5   :  { %v423_v48 = vadd.f32 %v4344_v46, %v4034_v28  ;;  %v417_v49 = vpop.f32.mrb[7].mxu0 }
 0x1c6   :  { %v418_v50 = vadd.f32 %v4034_v28, %v417_v49  ;;  %4371 = vmatprep.mubr.msk.f32.mxu1 %vm272_vm0, %v470_v45 }
 0x1c7   :  { %4372 = vmatmul.mubr.msk.f32.gmra.mrb[4].mxu1 %vm272_vm0, %v471_v47  ;;  %v473_v53 = vmax.f32 %v423_v48, 0.0 }
 0x1c8   :  { %v472_v51 = vmax.f32 %v418_v50, 0.0  ;;  %v4347_v52 = vpop.f32.mrb[8].mxu0 }
 0x1c9   :  { %v433_v54 = vadd.f32 %v4347_v52, %v4034_v28  ;;  %v427_v55 = vpop.f32.mrb[9].mxu0 }
 0x1ca   :  { %v428_v56 = vadd.f32 %v4034_v28, %v427_v55  ;;  %4374 = vmatprep.mubr.msk.f32.mxu1 %vm272_vm0, %v472_v51 }
 0x1cb   :  { %4375 = vmatmul.mubr.msk.f32.gmra.mrb[6].mxu1 %vm272_vm0, %v473_v53  ;;  %v475_v59 = vmax.f32 %v433_v54, 0.0 }
 0x1cc   :  { %v474_v57 = vmax.f32 %v428_v56, 0.0  ;;  %v4350_v58 = vpop.f32.mrb[10].mxu0 }
 0x1cd   :  { %v443_v60 = vadd.f32 %v4350_v58, %v4034_v28  ;;  %v437_v61 = vpop.f32.mrb[11].mxu0 }
 0x1ce   :  { %v438_v62 = vadd.f32 %v4034_v28, %v437_v61  ;;  %4377 = vmatprep.mubr.msk.f32.mxu1 %vm272_vm0, %v474_v57 }
 0x1cf   :  { %4378 = vmatmul.mubr.msk.f32.gmra.mrb[8].mxu1 %vm272_vm0, %v475_v59  ;;  %v477_v1 = vmax.f32 %v443_v60, 0.0 }
 0x1d0   :  { %v476_v63 = vmax.f32 %v438_v62, 0.0  ;;  %v4353_v0 = vpop.f32.mrb[12].mxu0 }
 0x1d1   :  { %v453_v2 = vadd.f32 %v4353_v0, %v4034_v28  ;;  %v447_v3 = vpop.f32.mrb[13].mxu0 }
 0x1d2   :  { %v448_v4 = vadd.f32 %v4034_v28, %v447_v3  ;;  %4380 = vmatprep.mubr.msk.f32.mxu1 %vm272_vm0, %v476_v63 }
 0x1d3   :  { %v479_v5 = vmax.f32 %v453_v2, 0.0  ;;  %4381 = vmatmul.mubr.msk.f32.gmra.mrb[10].mxu1 %vm272_vm0, %v477_v1 }
 0x1d4   :  { %v478_v6 = vmax.f32 %v448_v4, 0.0  ;;  %v4356_v7 = vpop.f32.mrb[14].mxu0 }
 0x1d5   :  { %v463_v8 = vadd.f32 %v4356_v7, %v4034_v28  ;;  %v457_v9 = vpop.f32.mrb[15].mxu0 }
 0x1d6   :  { %v458_v10 = vadd.f32 %v4034_v28, %v457_v9  ;;  %4383 = vmatprep.mubr.msk.f32.mxu1 %vm272_vm0, %v478_v6 }
 0x1d7   :  { %v481_v11 = vmax.f32 %v463_v8, 0.0  ;;  %4384 = vmatmul.mubr.msk.f32.gmra.mrb[12].mxu1 %vm272_vm0, %v479_v5 }
 0x1d8   :  { %v480_v12 = vmax.f32 %v458_v10, 0.0 }
 0x1da   :  { %4386 = vmatprep.mubr.msk.f32.mxu1 %vm272_vm0, %v480_v12 }
 0x1db   :  { %4387 = vmatmul.mubr.msk.f32.gmra.mrb[14].mxu1 %vm272_vm0, %v481_v11 }
 0x1dc   :  { %4396 = vmatprep.mubr.msk.f32.mxu1 %vm5118_vm1, %v5117_v13 }
 0x292   :  { %v4367_v14 = vpop.f32.mrb[0].mxu1 }
 0x293   :  { %v602_v15 = vpop.f32.mrb[1].mxu1  ;;  %v608_v34 = vadd.f32 %v4367_v14, %v4051_v30 }
 0x294   :  { %v603_v36 = vadd.f32 %v4051_v30, %v602_v15 }
 0x295   :  { %v682_v42 = vmax.f32 %v608_v34, 0.0 }
 0x296   :  { %v4370_v16 = vpop.f32.mrb[2].mxu1  ;;  %v681_v45 = vmax.f32 %v603_v36, 0.0 }
 0x297   :  { %v612_v25 = vpop.f32.mrb[3].mxu1  ;;  %v618_v43 = vadd.f32 %v4370_v16, %v4051_v30 }
 0x298   :  { %v613_v46 = vadd.f32 %v4051_v30, %v612_v25 }
 0x299   :  { %v684_v52 = vmax.f32 %v618_v43, 0.0 }
 0x29a   :  { %v4373_v26 = vpop.f32.mrb[4].mxu1  ;;  %v683_v55 = vmax.f32 %v613_v46, 0.0 }
 0x29b   :  { %v622_v27 = vpop.f32.mrb[5].mxu1  ;;  %v628_v53 = vadd.f32 %v4373_v26, %v4051_v30 }
 0x29c   :  { %v623_v56 = vadd.f32 %v4051_v30, %v622_v27 }
 0x29d   :  { %v686_v62 = vmax.f32 %v628_v53, 0.0 }
 0x29e   :  { %v4376_v28 = vpop.f32.mrb[6].mxu1  ;;  %v685_v1 = vmax.f32 %v623_v56, 0.0 }
 0x29f   :  { %v632_v29 = vpop.f32.mrb[7].mxu1  ;;  %v638_v63 = vadd.f32 %v4376_v28, %v4051_v30 }
 0x2a0   :  { %v633_v2 = vadd.f32 %v4051_v30, %v632_v29 }
 0x2a1   :  { %v688_v5 = vmax.f32 %v638_v63, 0.0 }
 0x2a2   :  { %v4379_v31 = vpop.f32.mrb[8].mxu1  ;;  %v687_v6 = vmax.f32 %v633_v2, 0.0 }
 0x2a3   :  { %v648_v32 = vadd.f32 %v4379_v31, %v4051_v30  ;;  %v642_v33 = vpop.f32.mrb[9].mxu1 }
 0x2a4   :  { %v643_v35 = vadd.f32 %v4051_v30, %v642_v33 }
 0x2a5   :  { %v690_v37 = vmax.f32 %v648_v32, 0.0 }
 0x2a6   :  { %v689_v38 = vmax.f32 %v643_v35, 0.0  ;;  %v4382_v39 = vpop.f32.mrb[10].mxu1 }
 0x2a7   :  { %v658_v40 = vadd.f32 %v4382_v39, %v4051_v30  ;;  %v652_v41 = vpop.f32.mrb[11].mxu1  ;;  %4395 = vmatpush3.xpose.msk.msra.mxu1 %vm272_vm0, %v690_v37 }
 0x2a8   :  { %v653_v44 = vadd.f32 %v4051_v30, %v652_v41  ;;  %4390 = vmatpush3.xpose.msk.msra.mxu0 %vm272_vm0, %v689_v38  ;;  %4404 = vmatprep.subr.mxu1 %v5117_v13 }
 0x2a9   :  { %v692_v47 = vmax.f32 %v658_v40, 0.0  ;;  %4399 = vmatprep.subr.mxu0 %v5117_v13 }
 0x2aa   :  { %v691_v48 = vmax.f32 %v653_v44, 0.0  ;;  %v4385_v49 = vpop.f32.mrb[12].mxu1  ;;  %4397 = vmatmul.mubr.msk.f32.vlgmr.msra.gmra.mrb[16].mxu1 %vm272_vm0, %v682_v42 }
 0x2ab   :  { %v668_v50 = vadd.f32 %v4385_v49, %v4051_v30  ;;  %v662_v51 = vpop.f32.mrb[13].mxu1  ;;  %4392 = vmatmul.mubr.msk.f32.vlgmr.msra.gmra.mrb[16].mxu0 %vm272_vm0, %v681_v45  ;;  %4405 = vmatpush3.xpose.msk.msra.mxu1 %vm272_vm0, %v692_v47 }
 0x2ac   :  { %v663_v54 = vadd.f32 %v4051_v30, %v662_v51  ;;  %4400 = vmatpush3.xpose.msk.msra.mxu0 %vm272_vm0, %v691_v48  ;;  %4406 = vmatprep.mubr.msk.f32.mxu1 %vm5118_vm1, %v5117_v13 }
 0x2ad   :  { %v694_v57 = vmax.f32 %v668_v50, 0.0  ;;  %4401 = vmatprep.mubr.msk.f32.mxu0 %vm5118_vm1, %v5117_v13  ;;  %4414 = vmatprep.subr.mxu1 %v5117_v13 }
 0x2ae   :  { %v693_v58 = vmax.f32 %v663_v54, 0.0  ;;  %v4388_v59 = vpop.f32.mrb[14].mxu1  ;;  %4407 = vmatmul.mubr.msk.f32.vlgmr.msra.gmra.mrb[18].mxu1 %vm272_vm0, %v684_v52  ;;  %4409 = vmatprep.subr.mxu0 %v5117_v13 }
 0x2af   :  { %v678_v60 = vadd.f32 %v4388_v59, %v4051_v30  ;;  %v672_v61 = vpop.f32.mrb[15].mxu1  ;;  %4402 = vmatmul.mubr.msk.f32.vlgmr.msra.gmra.mrb[18].mxu0 %vm272_vm0, %v683_v55  ;;  %4415 = vmatpush3.xpose.msk.msra.mxu1 %vm272_vm0, %v694_v57 }
 0x2b0   :  { %v673_v0 = vadd.f32 %v4051_v30, %v672_v61  ;;  %4410 = vmatpush3.xpose.msk.msra.mxu0 %vm272_vm0, %v693_v58  ;;  %4416 = vmatprep.mubr.msk.f32.mxu1 %vm5118_vm1, %v5117_v13 }
 0x2b1   :  { %v696_v3 = vmax.f32 %v678_v60, 0.0  ;;  %4411 = vmatprep.mubr.msk.f32.mxu0 %vm5118_vm1, %v5117_v13  ;;  %4424 = vmatprep.subr.mxu1 %v5117_v13 }
 0x2b2   :  { %v695_v4 = vmax.f32 %v673_v0, 0.0  ;;  %4417 = vmatmul.mubr.msk.f32.vlgmr.msra.gmra.mrb[20].mxu1 %vm272_vm0, %v686_v62  ;;  %4419 = vmatprep.subr.mxu0 %v5117_v13 }
 0x2b3   :  { %4412 = vmatmul.mubr.msk.f32.vlgmr.msra.gmra.mrb[20].mxu0 %vm272_vm0, %v685_v1  ;;  %4425 = vmatpush3.xpose.msk.msra.mxu1 %vm272_vm0, %v696_v3 }
 0x2b4   :  { %4420 = vmatpush3.xpose.msk.msra.mxu0 %vm272_vm0, %v695_v4  ;;  %4426 = vmatprep.mubr.msk.f32.mxu1 %vm5118_vm1, %v5117_v13 }
 0x2b5   :  { %4421 = vmatprep.mubr.msk.f32.mxu0 %vm5118_vm1, %v5117_v13  ;;  %4429 = vmatprep.subr.mxu0 %v5117_v13 }
 0x2b6   :  { %4427 = vmatmul.mubr.msk.f32.vlgmr.msra.gmra.mrb[22].mxu1 %vm272_vm0, %v688_v5  ;;  %4434 = vmatprep.subr.mxu1 %v5117_v13 }
 0x2b7   :  { %4422 = vmatmul.mubr.msk.f32.vlgmr.msra.gmra.mrb[22].mxu0 %vm272_vm0, %v687_v6  ;;  %4435 = vmatpush3.msra.mxu1 %v5425_v18 }
 0x2b8   :  { %4430 = vmatpush3.msra.mxu0 %v5420_v17  ;;  %4431 = vmatprep.mubr.msk.f32.mxu0 %vm5118_vm1, %v5117_v13 }
 0x2b9   :  { %4439 = vmatprep.subr.mxu0 %v5117_v13  ;;  %4436 = vmatprep.mubr.msk.f32.mxu1 %vm5118_vm1, %v5117_v13 }
 0x2ba   :  { %4444 = vmatprep.subr.mxu1 %v5117_v13 }
 0x37d   :  { %v5525_v7 = vpop.f32.mrb[16].mxu1 }
 0x37e   :  { %v5527_v8 = vpop.f32.mrb[16].mxu0  ;;  %v4398_v9 = vpop.f32.mrb[17].mxu1  ;;  %v1309_v18 = vsel %vm1305_vm2, %v5525_v7, -inf }
 0x37f   :  { %v4393_v17 = vpop.f32.mrb[17].mxu0  ;;  %v1306_v10 = vsel %vm1305_vm2, %v5527_v8, -inf  ;;  %v1400_v11 = vrot.slane %v1309_v18, 4 }
 0x380   :  { %1307 = vmax.xlane.f32.xlu0 %v1306_v10  ;;  %v1394_v12 = vrot.slane %v1306_v10, 4 }
 0x381   :  { %v5533_v14 = vpop.f32.mrb[18].mxu1  ;;  %v1401_v15 = vmax.f32 %v1309_v18, %v1400_v11 }
 0x382   :  { %v1395_v16 = vmax.f32 %v1306_v10, %v1394_v12  ;;  %v5535_v25 = vpop.f32.mrb[18].mxu0  ;;  %v4408_v26 = vpop.f32.mrb[19].mxu1  ;;  %v1315_v27 = vsel %vm1305_vm2, %v5533_v14, -inf }
 0x383   :  { %v4403_v28 = vpop.f32.mrb[19].mxu0  ;;  %v1402_v29 = vrot.slane %v1401_v15, 2  ;;  %v1312_v30 = vsel %vm1305_vm2, %v5535_v25, -inf  ;;  %v1412_v31 = vrot.slane %v1315_v27, 4 }
 0x384   :  { %v1396_v32 = vrot.slane %v1395_v16, 2  ;;  %1310 = vmax.xlane.f32.xlu0 %v1309_v18  ;;  %1313 = vmax.xlane.f32.xlu1 %v1312_v30  ;;  %v1406_v33 = vrot.slane %v1312_v30, 4 }
 0x385   :  { %v1403_v34 = vmax.f32 %v1401_v15, %v1402_v29  ;;  %v5541_v35 = vpop.f32.mrb[20].mxu1  ;;  %v1413_v36 = vmax.f32 %v1315_v27, %v1412_v31 }
 0x386   :  { %v1397_v37 = vmax.f32 %v1395_v16, %v1396_v32  ;;  %v1407_v38 = vmax.f32 %v1312_v30, %v1406_v33  ;;  %v5543_v39 = vpop.f32.mrb[20].mxu0  ;;  %v4418_v40 = vpop.f32.mrb[21].mxu1  ;;  %v1321_v41 = vsel %vm1305_vm2, %v5541_v35, -inf }
 0x387   :  { %v1404_v42 = vrot.slane %v1403_v34, 1  ;;  %v4413_v43 = vpop.f32.mrb[21].mxu0  ;;  %v1414_v44 = vrot.slane %v1413_v36, 2  ;;  %v1318_v45 = vsel %vm1305_vm2, %v5543_v39, -inf  ;;  %v1424_v46 = vrot.slane %v1321_v41, 4 }
 0x388   :  { %v1398_v47 = vrot.slane %v1397_v37, 1  ;;  %v1408_v48 = vrot.slane %v1407_v38, 2  ;;  %1316 = vmax.xlane.f32.xlu1 %v1315_v27  ;;  %1319 = vmax.xlane.f32.xlu0 %v1318_v45  ;;  %v1418_v49 = vrot.slane %v1318_v45, 4 }
 0x389   :  { %v5549_v50 = vmax.f32 %v1403_v34, %v1404_v42  ;;  %v1415_v51 = vmax.f32 %v1413_v36, %v1414_v44  ;;  %v5551_v52 = vpop.f32.mrb[22].mxu1  ;;  %v1425_v53 = vmax.f32 %v1321_v41, %v1424_v46 }
 0x38a   :  { %v5553_v54 = vmax.f32 %v1397_v37, %v1398_v47  ;;  %v1409_v55 = vmax.f32 %v1407_v38, %v1408_v48  ;;  %v1419_v56 = vmax.f32 %v1318_v45, %v1418_v49  ;;  %v5555_v57 = vpop.f32.mrb[22].mxu0  ;;  %v4428_v58 = vpop.f32.mrb[23].mxu1  ;;  %v1327_v59 = vsel %vm1305_vm2, %v5551_v52, -inf }
 0x38b   :  { %v1443_v60 = vsub.f32 %v5525_v7, %v5549_v50  ;;  %v1416_v61 = vrot.slane %v1415_v51, 1  ;;  %v4423_v62 = vpop.f32.mrb[23].mxu0  ;;  %v1426_v63 = vrot.slane %v1425_v53, 2  ;;  %v1324_v0 = vsel %vm1305_vm2, %v5555_v57, -inf }
 0x38c   :  { %v1442_v1 = vsub.f32 %v5527_v8, %v5553_v54  ;;  %v1410_v2 = vrot.slane %v1409_v55, 1  ;;  %v1420_v3 = vrot.slane %v1419_v56, 2  ;;  %1322 = vmax.xlane.f32.xlu1 %v1321_v41  ;;  %1325 = vmax.xlane.f32.xlu0 %v1324_v0  ;;  %v1430_v4 = vrot.slane %v1324_v0, 4 }
 0x38d   :  { %v5565_v5 = vmax.f32 %v1415_v51, %v1416_v61  ;;  %v1427_v6 = vmax.f32 %v1425_v53, %v1426_v63  ;;  %v1436_v9 = vrot.slane %v1327_v59, 4 }
 0x38e   :  { %v1411_v18 = vmax.f32 %v1409_v55, %v1410_v2  ;;  %v1421_v17 = vmax.f32 %v1419_v56, %v1420_v3  ;;  %v1431_v10 = vmax.f32 %v1324_v0, %v1430_v4  ;;  %v1450_v4 = vmul.f32 1.442695, %v1442_v1 }
 0x38f   :  { %v1445_v11 = vsub.f32 %v5533_v14, %v5565_v5  ;;  %v1428_v12 = vrot.slane %v1427_v6, 1  ;;  %v1437_v15 = vmax.f32 %v1327_v59, %v1436_v9 }
 0x390   :  { %v1444_v16 = vsub.f32 %v5535_v25, %v1411_v18  ;;  %v1422_v26 = vrot.slane %v1421_v17, 1  ;;  %v1432_v27 = vrot.slane %v1431_v10, 2  ;;  %1328 = vmax.xlane.f32.xlu1 %v1327_v59 }
 0x391   :  { %v5570_v28 = vmax.f32 %v1427_v6, %v1428_v12  ;;  %v1438_v29 = vrot.slane %v1437_v15, 2 }
 0x392   :  { %v5572_v30 = vmax.f32 %v1421_v17, %v1422_v26  ;;  %v1433_v31 = vmax.f32 %v1431_v10, %v1432_v27 }
 0x393   :  { %v1447_v32 = vsub.f32 %v5541_v35, %v5570_v28  ;;  %v1439_v33 = vmax.f32 %v1437_v15, %v1438_v29  ;;  %v1454_v15 = vmul.f32 1.442695, %v1444_v16  ;;  %v1456_v29 = vmul.f32 1.442695, %v1445_v11 }
 0x394   :  { %v1446_v34 = vsub.f32 %v5543_v39, %v5572_v30  ;;  %v1434_v36 = vrot.slane %v1433_v31, 1 }
 0x395   :  { %v1440_v37 = vrot.slane %v1439_v33, 1  ;;  %v1460_v5 = vmul.f32 1.442695, %v1447_v32 }
 0x396   :  { %v5578_v38 = vmax.f32 %v1433_v31, %v1434_v36 }
 0x397   :  { %v5580_v40 = vmax.f32 %v1439_v33, %v1440_v37  ;;  %v1452_v33 = vmul.f32 1.442695, %v1443_v60 }
 0x398   :  { %v1448_v41 = vsub.f32 %v5555_v57, %v5578_v38 }
 0x399   :  { %v1449_v42 = vsub.f32 %v5551_v52, %v5580_v40 }
 0x40d   :  { %v1308_v43 = vpop.xlane.xlu0 %1307 }
 0x40e   :  { %v1330_v44 = vsub.f32 %v5527_v8, %v1308_v43 }
 0x410   :  { %v1338_v45 = vmul.f32 1.442695, %v1330_v44 }
 0x411   :  { %v1311_v46 = vpop.xlane.xlu0 %1310  ;;  %v1314_v47 = vpop.xlane.xlu1 %1313 }
 0x412   :  { %4746 = vpow2.f32 %v1338_v45  ;;  %v1331_v48 = vsub.f32 %v5525_v7, %v1311_v46  ;;  %v1332_v49 = vsub.f32 %v5535_v25, %v1314_v47  ;;  %v1458_v7 = vmul.f32 1.442695, %v1446_v34 }
 0x414   :  { %v1340_v51 = vmul.f32 1.442695, %v1331_v48  ;;  %v1342_v53 = vmul.f32 1.442695, %v1332_v49 }
 0x415   :  { %v1317_v54 = vpop.xlane.xlu1 %1316  ;;  %v1320_v55 = vpop.xlane.xlu0 %1319 }
 0x416   :  { %4748 = vpow2.f32 %v1340_v51  ;;  %v1333_v56 = vsub.f32 %v5533_v14, %v1317_v54  ;;  %v1334_v58 = vsub.f32 %v5543_v39, %v1320_v55  ;;  %v1462_v39 = vmul.f32 1.442695, %v1448_v41 }
 0x417   :  { %4750 = vpow2.f32 %v1342_v53 }
 0x418   :  { %v1344_v59 = vmul.f32 1.442695, %v1333_v56  ;;  %v1346_v8 = vmul.f32 1.442695, %v1334_v58 }
 0x419   :  { %v1323_v61 = vpop.xlane.xlu1 %1322  ;;  %v1326_v62 = vpop.xlane.xlu0 %1325 }
 0x41a   :  { %4752 = vpow2.f32 %v1344_v59  ;;  %v1335_v63 = vsub.f32 %v5541_v35, %v1323_v61  ;;  %v1336_v0 = vsub.f32 %v5555_v57, %v1326_v62  ;;  %v1464_v35 = vmul.f32 1.442695, %v1449_v42 }
 0x41b   :  { %4754 = vpow2.f32 %v1346_v8 }
 0x41c   :  { %v5593_v25 = vpop.eup %4746  ;;  %v1348_v2 = vmul.f32 1.442695, %v1335_v63  ;;  %v1350_v3 = vmul.f32 1.442695, %v1336_v0 }
 0x41d   :  { %v1329_v6 = vpop.xlane.xlu1 %1328  ;;  %v1354_v9 = vsel %vm1305_vm2, %v5593_v25, 0.0 }
 0x41e   :  { %4756 = vpow2.f32 %v1348_v2  ;;  %v1337_v18 = vsub.f32 %v5551_v52, %v1329_v6  ;;  %1355 = vadd.xlane.f32.xlu0 %v1354_v9 }
 0x41f   :  { %4758 = vpow2.f32 %v1350_v3 }
 0x420   :  { %v5598_v17 = vpop.eup %4748  ;;  %v1352_v10 = vmul.f32 1.442695, %v1337_v18  ;;  %4760 = vpow2.f32 %v1450_v4 }
 0x421   :  { %v5600_v12 = vpop.eup %4750  ;;  %v1357_v26 = vsel %vm1305_vm2, %v5598_v17, 0.0 }
 0x422   :  { %4762 = vpow2.f32 %v1352_v10  ;;  %1358 = vadd.xlane.f32.xlu1 %v1357_v26  ;;  %v1360_v1 = vsel %vm1305_vm2, %v5600_v12, 0.0 }
 0x423   :  { %1361 = vadd.xlane.f32.xlu0 %v1360_v1  ;;  %4764 = vpow2.f32 %v1454_v15 }
 0x424   :  { %v5606_v27 = vpop.eup %4752  ;;  %4766 = vpow2.f32 %v1456_v29 }
 0x425   :  { %v5611_v31 = vpop.eup %4754  ;;  %v1363_v16 = vsel %vm1305_vm2, %v5606_v27, 0.0  ;;  %4768 = vpow2.f32 %v1452_v33 }
 0x426   :  { %1364 = vadd.xlane.f32.xlu1 %v1363_v16  ;;  %v1366_v36 = vsel %vm1305_vm2, %v5611_v31, 0.0  ;;  %4770 = vpow2.f32 %v1460_v5 }
 0x427   :  { %1367 = vadd.xlane.f32.xlu0 %v1366_v36  ;;  %4772 = vpow2.f32 %v1458_v7 }
 0x428   :  { %v5620_v37 = vpop.eup %4756  ;;  %4774 = vpow2.f32 %v1464_v35 }
 0x429   :  { %v5622_v14 = vpop.eup %4758  ;;  %v1369_v11 = vsel %vm1305_vm2, %v5620_v37, 0.0  ;;  %4776 = vpow2.f32 %v1462_v39 }
 0x42a   :  { %1370 = vadd.xlane.f32.xlu1 %v1369_v11  ;;  %v1372_v50 = vsel %vm1305_vm2, %v5622_v14, 0.0  ;;  %v5634_v60 = vpop.eup %4760 }
 0x42b   :  { %1373 = vadd.xlane.f32.xlu0 %v1372_v50  ;;  %v1466_v30 = vsel %vm1305_vm2, %v5634_v60, 0.0 }
 0x42c   :  { %v5636_v43 = vpop.eup %4762  ;;  %v1467_v34 = vrot.slane %v1466_v30, 4 }
 0x42d   :  { %v1375_v28 = vsel %vm1305_vm2, %v5636_v43, 0.0  ;;  %v5648_v32 = vpop.eup %4764 }
 0x42e   :  { %1376 = vadd.xlane.f32.xlu1 %v1375_v28  ;;  %v5650_v44 = vpop.eup %4766  ;;  %v1480_v52 = vsel %vm1305_vm2, %v5648_v32, 0.0  ;;  %v1468_v42 = vadd.f32 %v1467_v34, %v1466_v30 }
 0x42f   :  { %v5654_v40 = vpop.eup %4768  ;;  %v1481_v45 = vrot.slane %v1480_v52, 4  ;;  %v1487_v57 = vsel %vm1305_vm2, %v5650_v44, 0.0 }
 0x430   :  { %v5658_v38 = vpop.eup %4770  ;;  %v1473_v41 = vsel %vm1305_vm2, %v5654_v40, 0.0  ;;  %v1488_v47 = vrot.slane %v1487_v57, 4  ;;  %v1469_v48 = vrot.slane %v1468_v42, 2 }
 0x431   :  { %v5662_v46 = vpop.eup %4772  ;;  %v1482_v49 = vadd.f32 %v1481_v45, %v1480_v52  ;;  %v1474_v51 = vrot.slane %v1473_v41, 4  ;;  %v1501_v53 = vsel %vm1305_vm2, %v5658_v38, 0.0 }
 0x432   :  { %v5666_v54 = vpop.eup %4774  ;;  %v1494_v55 = vsel %vm1305_vm2, %v5662_v46, 0.0  ;;  %v1489_v58 = vadd.f32 %v1488_v47, %v1487_v57  ;;  %v1470_v59 = vadd.f32 %v1469_v48, %v1468_v42  ;;  %v1502_v61 = vrot.slane %v1501_v53, 4 }
 0x433   :  { %v5670_v56 = vpop.eup %4776  ;;  %v1483_v8 = vrot.slane %v1482_v49, 2  ;;  %v1475_v62 = vadd.f32 %v1474_v51, %v1473_v41  ;;  %v1495_v63 = vrot.slane %v1494_v55, 4  ;;  %v1515_v0 = vsel %vm1305_vm2, %v5666_v54, 0.0 }
 0x434   :  { %v1508_v2 = vsel %vm1305_vm2, %v5670_v56, 0.0  ;;  %v1490_v3 = vrot.slane %v1489_v58, 2  ;;  %v1471_v4 = vrot.slane %v1470_v59, 1  ;;  %v1503_v9 = vadd.f32 %v1502_v61, %v1501_v53 }
 0x435   :  { %v1484_v6 = vadd.f32 %v1483_v8, %v1482_v49  ;;  %v1516_v18 = vrot.slane %v1515_v0, 4  ;;  %v1476_v10 = vrot.slane %v1475_v62, 2  ;;  %v1496_v15 = vadd.f32 %v1495_v63, %v1494_v55 }
 0x436   :  { %v1509_v26 = vrot.slane %v1508_v2, 4  ;;  %v1491_v1 = vadd.f32 %v1490_v3, %v1489_v58  ;;  %v1472_v29 = vadd.f32 %v1471_v4, %v1470_v59  ;;  %v1504_v33 = vrot.slane %v1503_v9, 2 }
 0x437   :  { %v1485_v16 = vrot.slane %v1484_v6, 1  ;;  %v1517_v36 = vadd.f32 %v1516_v18, %v1515_v0  ;;  %v1477_v5 = vadd.f32 %v1476_v10, %v1475_v62  ;;  %v1497_v11 = vrot.slane %v1496_v15, 2 }
 0x438   :  { %v1510_v7 = vadd.f32 %v1509_v26, %v1508_v2  ;;  %v1492_v50 = vrot.slane %v1491_v1, 1  ;;  %4778 = vrcp.f32 %v1472_v29  ;;  %v1505_v28 = vadd.f32 %v1504_v33, %v1503_v9 }
 0x439   :  { %v1486_v35 = vadd.f32 %v1485_v16, %v1484_v6  ;;  %v1518_v39 = vrot.slane %v1517_v36, 2  ;;  %v1478_v30 = vrot.slane %v1477_v5, 1  ;;  %v1498_v34 = vadd.f32 %v1497_v11, %v1496_v15 }
 0x43a   :  { %v1511_v52 = vrot.slane %v1510_v7, 2  ;;  %v1493_v42 = vadd.f32 %v1492_v50, %v1491_v1  ;;  %v1506_v45 = vrot.slane %v1505_v28, 1 }
 0x43b   :  { %4780 = vrcp.f32 %v1486_v35  ;;  %v1519_v57 = vadd.f32 %v1518_v39, %v1517_v36  ;;  %v1479_v41 = vadd.f32 %v1478_v30, %v1477_v5  ;;  %v1499_v47 = vrot.slane %v1498_v34, 1  ;;  %v5744_v35 = vld [vmem:[#allocation2 + $0x20] sm:$0xff] }
 0x43c   :  { %v1512_v48 = vadd.f32 %v1511_v52, %v1510_v7  ;;  %4782 = vrcp.f32 %v1493_v42  ;;  %v1507_v49 = vadd.f32 %v1506_v45, %v1505_v28  ;;  %v237_v30 = vld [vmem:[#allocation11] sm:$0xff]  ;;  %v5751_v52 = vld [vmem:[#allocation2 + $0x18] sm:$0xff] }
 0x43d   :  { %v1520_v51 = vrot.slane %v1519_v57, 1  ;;  %4784 = vrcp.f32 %v1479_v41  ;;  %v1500_v53 = vadd.f32 %v1499_v47, %v1498_v34  ;;  %v238_v34 = vld [vmem:[#allocation11 + $0x8] sm:$0xff]  ;;  %v5764_v47 = vld [vmem:[#allocation2 + $0x30] sm:$0xff] }
 0x43e   :  { %v1513_v55 = vrot.slane %v1512_v48, 1  ;;  %4786 = vrcp.f32 %v1507_v49  ;;  %v5759_v41 = vld [vmem:[#allocation2 + $0x28] sm:$0xff]  ;;  %v5772_v49 = vld [vmem:[#allocation2 + $0x38] sm:$0xff] }
 0x43f   :  { %v1521_v59 = vadd.f32 %v1520_v51, %v1519_v57  ;;  %4788 = vrcp.f32 %v1500_v53  ;;  %v4665_v57 = vpack.c.bf16 %v238_v34, %v237_v30  ;;  %v239_v53 = vld [vmem:[#allocation11 + $0x10] sm:$0xff]  ;;  %v245_v34 = vld [vmem:[%s5958_s9 + $0x18] sm:$0xff] }
 0x440   :  { %v1514_v61 = vadd.f32 %v1513_v55, %v1512_v48  ;;  %v240_v55 = vld [vmem:[#allocation11 + $0x18] sm:$0xff]  ;;  %v244_v30 = vld [vmem:[%s5958_s9 + $0x10] sm:$0xff] }
 0x441   :  { %4790 = vrcp.f32 %v1521_v59  ;;  %v233_v59 = vld [vmem:[#allocation10] sm:$0xff] }
 0x442   :  { %v4779_v58 = vpop.eup %4778  ;;  %4792 = vrcp.f32 %v1514_v61 }
 0x443   :  { %v1530_v8 = vmul.f32 %v4779_v58, %v5634_v60  ;;  %v4669_v58 = vpack.c.bf16 %v240_v55, %v239_v53 }
 0x445   :  { %v4781_v62 = vpop.eup %4780 }
 0x446   :  { %v1532_v63 = vmul.f32 %v4781_v62, %v5648_v32  ;;  %v4783_v0 = vpop.eup %4782  ;;  %v242_v62 = vld [vmem:[%s5958_s9] sm:$0xff] }
 0x447   :  { %v4785_v2 = vpop.eup %4784  ;;  %v1533_v3 = vmul.f32 %v4783_v0, %v5650_v44 }
 0x448   :  { %v4787_v4 = vpop.eup %4786  ;;  %v1531_v6 = vmul.f32 %v4785_v2, %v5654_v40 }
 0x449   :  { %v4789_v9 = vpop.eup %4788  ;;  %v1535_v60 = vmul.f32 %v4787_v4, %v5658_v38  ;;  %v236_v4 = vld [vmem:[#allocation10 + $0x18] sm:$0xff] }
 0x44a   :  { %v1534_v10 = vmul.f32 %v4789_v9, %v5662_v46 }
 0x44b   :  { %v4791_v18 = vpop.eup %4790 }
 0x44c   :  { %v4793_v15 = vpop.eup %4792  ;;  %v1537_v32 = vmul.f32 %v4791_v18, %v5666_v54 }
 0x44d   :  { %v1536_v26 = vmul.f32 %v4793_v15, %v5670_v56 }
 0x458   :  { %2122 = vxpose.xlu0.b32.start.end [1/1] (short) (narrow) %v1530_v8, 8  ;;  %v234_v8 = vld [vmem:[#allocation10 + $0x8] sm:$0xff] }
 0x459   :  { %v4673_v61 = vpack.c.bf16 %v234_v8, %v233_v59 }
 0x45c   :  { %2332 = vxpose.xlu0.b32.start.end [1/1] (short) (narrow) %v1532_v63, 8  ;;  %v243_v63 = vld [vmem:[%s5958_s9 + $0x8] sm:$0xff] }
 0x45d   :  { %v4681_v0 = vpack.c.bf16 %v243_v63, %v242_v62 }
 0x460   :  { %2437 = vxpose.xlu0.b32.start.end [1/1] (short) (narrow) %v1533_v3, 8  ;;  %v235_v3 = vld [vmem:[#allocation10 + $0x10] sm:$0xff] }
 0x461   :  { %2227 = vxpose.xlu1.b32.start.end [1/1] (short) (narrow) %v1531_v6, 8  ;;  %v4677_v9 = vpack.c.bf16 %v236_v4, %v235_v3 }
 0x464   :  { %2647 = vxpose.xlu0.b32.start.end [1/1] (short) (narrow) %v1535_v60, 8 }
 0x465   :  { %2542 = vxpose.xlu1.b32.start.end [1/1] (short) (narrow) %v1534_v10, 8 }
 0x468   :  { %2857 = vxpose.xlu0.b32.start.end [1/1] (short) (narrow) %v1537_v32, 8 }
 0x469   :  { %2752 = vxpose.xlu1.b32.start.end [1/1] (short) (narrow) %v1536_v26, 8 }
 0x4ab   :  { %v1356_v44 = vpop.xlane.xlu0 %1355 }
 0x4ac   :  { %4794 = vrcp.f32 %v1356_v44 }
 0x4af   :  { %v1359_v40 = vpop.xlane.xlu1 %1358 }
 0x4b0   :  { %4796 = vrcp.f32 %v1359_v40  ;;  %v1362_v1 = vpop.xlane.xlu0 %1361 }
 0x4b1   :  { %4798 = vrcp.f32 %v1362_v1 }
 0x4b3   :  { %v1365_v29 = vpop.xlane.xlu1 %1364 }
 0x4b4   :  { %4800 = vrcp.f32 %v1365_v29  ;;  %v1368_v38 = vpop.xlane.xlu0 %1367 }
 0x4b5   :  { %4802 = vrcp.f32 %v1368_v38 }
 0x4b6   :  { %v4795_v46 = vpop.eup %4794 }
 0x4b7   :  { %v1386_v16 = vmul.f32 %v4795_v46, %v5593_v25  ;;  %v1371_v33 = vpop.xlane.xlu1 %1370 }
 0x4b8   :  { %4804 = vrcp.f32 %v1371_v33  ;;  %v1374_v54 = vpop.xlane.xlu0 %1373 }
 0x4b9   :  { %4806 = vrcp.f32 %v1374_v54  ;;  %4432 = vmatmul.mubr.msk.f32.vlgmr.msra.gmra.mrb[24].mxu0 %vm1305_vm2, %v1386_v16 }
 0x4ba   :  { %v4797_v56 = vpop.eup %4796  ;;  %4440 = vmatpush3.msra.mxu0 %v5427_v19  ;;  %4441 = vmatprep.mubr.msk.f32.mxu0 %vm5118_vm1, %v5117_v13 }
 0x4bb   :  { %v4799_v36 = vpop.eup %4798  ;;  %v1387_v5 = vmul.f32 %v4797_v56, %v5598_v17  ;;  %v1377_v11 = vpop.xlane.xlu1 %1376  ;;  %4449 = vmatprep.subr.mxu0 %v5117_v13 }
 0x4bc   :  { %v1388_v25 = vmul.f32 %v4799_v36, %v5600_v12  ;;  %4808 = vrcp.f32 %v1377_v11 }
 0x4bd   :  { %4437 = vmatmul.mubr.msk.f32.vlgmr.msra.gmra.mrb[24].mxu1 %vm1305_vm2, %v1387_v5 }
 0x4be   :  { %v4801_v7 = vpop.eup %4800  ;;  %4442 = vmatmul.mubr.msk.f32.vlgmr.msra.gmra.mrb[26].mxu0 %vm1305_vm2, %v1388_v25  ;;  %4445 = vmatpush3.msra.mxu1 %v5433_v20 }
 0x4bf   :  { %v4803_v19 = vpop.eup %4802  ;;  %v1389_v50 = vmul.f32 %v4801_v7, %v5606_v27  ;;  %4446 = vmatprep.mubr.msk.f32.mxu1 %vm5118_vm1, %v5117_v13  ;;  %4450 = vmatpush3.msra.mxu0 %v5435_v21 }
 0x4c0   :  { %v1390_v17 = vmul.f32 %v4803_v19, %v5611_v31  ;;  %4451 = vmatprep.mubr.msk.f32.mxu0 %vm5118_vm1, %v5117_v13  ;;  %4454 = vmatprep.subr.mxu1 %v5117_v13 }
 0x4c1   :  { %4447 = vmatmul.mubr.msk.f32.vlgmr.msra.gmra.mrb[26].mxu1 %vm1305_vm2, %v1389_v50  ;;  %4459 = vmatprep.subr.mxu0 %v5117_v13 }
 0x4c2   :  { %v4805_v20 = vpop.eup %4804  ;;  %4452 = vmatmul.mubr.msk.f32.vlgmr.msra.gmra.mrb[28].mxu0 %vm1305_vm2, %v1390_v17  ;;  %4455 = vmatpush3.msra.mxu1 %v5441_v22 }
 0x4c3   :  { %v4807_v12 = vpop.eup %4806  ;;  %v1391_v27 = vmul.f32 %v4805_v20, %v5620_v37  ;;  %4456 = vmatprep.mubr.msk.f32.mxu1 %vm5118_vm1, %v5117_v13  ;;  %4460 = vmatpush3.msra.mxu0 %v5443_v23  ;;  %v5722_v23 = vld [vmem:[#allocation2] sm:$0xff]  ;;  %v5730_v37 = vld [vmem:[#allocation2 + $0x8] sm:$0xff] }
 0x4c4   :  { %v1392_v21 = vmul.f32 %v4807_v12, %v5622_v14  ;;  %4461 = vmatprep.mubr.msk.f32.mxu0 %vm5118_vm1, %v5117_v13  ;;  %4464 = vmatprep.subr.mxu1 %v5117_v13  ;;  %v5737_v14 = vld [vmem:[#allocation2 + $0x10] sm:$0xff] }
 0x4c5   :  { %4457 = vmatmul.mubr.msk.f32.vlgmr.msra.gmra.mrb[28].mxu1 %vm1305_vm2, %v1391_v27  ;;  %4469 = vmatprep.subr.mxu0 %v5117_v13 }
 0x4c6   :  { %v4809_v22 = vpop.eup %4808  ;;  %4462 = vmatmul.mubr.msk.f32.vlgmr.msra.gmra.mrb[30].mxu0 %vm1305_vm2, %v1392_v21  ;;  %4465 = vmatpush3.msra.mxu1 %v5449_v24 }
 0x4c7   :  { %v1393_v31 = vmul.f32 %v4809_v22, %v5636_v43  ;;  %4466 = vmatprep.mubr.msk.f32.mxu1 %vm5118_vm1, %v5117_v13  ;;  %4470 = vmatpush3.msra.mxu0 %v5722_v23 }
 0x4c8   :  { %4471 = vmatprep.mubr.msk.f32.mxu0 %vm5118_vm1, %v5117_v13  ;;  %4474 = vmatprep.subr.mxu1 %v5117_v13 }
 0x4c9   :  { %4467 = vmatmul.mubr.msk.f32.vlgmr.msra.gmra.mrb[30].mxu1 %vm1305_vm2, %v1393_v31  ;;  %4479 = vmatprep.subr.mxu0 %v5117_v13 }
 0x4ca   :  { %4475 = vmatpush3.msra.mxu1 %v5730_v37  ;;  %4476 = vmatprep.mubr.msk.f32.mxu1 %vm5118_vm1, %v5117_v13 }
 0x4cb   :  { %4484 = vmatprep.subr.mxu1 %v5117_v13 }
 0x4d8   :  { %v2138_v24 = vpop.trf.xlu0 }
 0x4d9   :  { %4472 = vmatmul.mubr.msk.f32.vlgmr.msra.gmra.mrb[32].mxu0 %vm1305_vm2, %v2138_v24  ;;  %v4820_v24 = vld [vmem:[#allocation5 + $0x10] sm:$0xff] }
 0x4da   :  { %4480 = vmatpush3.msra.mxu0 %v5737_v14  ;;  %4481 = vmatprep.mubr.msk.f32.mxu0 %vm5118_vm1, %v5117_v13 }
 0x4db   :  { %4489 = vmatprep.subr.mxu0 %v5117_v13 }
 0x4dc   :  { %v2348_v43 = vpop.trf.xlu0 }
 0x4dd   :  { %4482 = vmatmul.mubr.msk.f32.vlgmr.msra.gmra.mrb[34].mxu0 %vm1305_vm2, %v2348_v43  ;;  %v4822_v43 = vld [vmem:[#allocation5 + $0x20] sm:$0xff] }
 0x4de   :  { %4490 = vmatpush3.msra.mxu0 %v5744_v35  ;;  %4491 = vmatprep.mubr.msk.f32.mxu0 %vm5118_vm1, %v5117_v13 }
 0x4df   :  { %4499 = vmatprep.subr.mxu0 %v5117_v13 }
 0x4e0   :  { %v2453_v28 = vpop.trf.xlu0 }
 0x4e1   :  { %v2243_v39 = vpop.trf.xlu1 }
 0x4e2   :  { %4477 = vmatmul.mubr.msk.f32.vlgmr.msra.gmra.mrb[32].mxu1 %vm1305_vm2, %v2243_v39  ;;  %v4825_v39 = vld [vmem:[#allocation5 + $0x38] sm:$0xff] }
 0x4e3   :  { %4485 = vmatpush3.msra.mxu1 %v5751_v52  ;;  %4486 = vmatprep.mubr.msk.f32.mxu1 %vm5118_vm1, %v5117_v13 }
 0x4e4   :  { %4494 = vmatprep.subr.mxu1 %v5117_v13  ;;  %v2663_v45 = vpop.trf.xlu0 }
 0x4e5   :  { %v2558_v42 = vpop.trf.xlu1 }
 0x4e6   :  { %4487 = vmatmul.mubr.msk.f32.vlgmr.msra.gmra.mrb[34].mxu1 %vm1305_vm2, %v2453_v28  ;;  %4492 = vmatmul.mubr.msk.f32.vlgmr.msra.gmra.mrb[36].mxu0 %vm1305_vm2, %v2558_v42  ;;  %v4824_v28 = vld [vmem:[#allocation5 + $0x30] sm:$0xff]  ;;  %v4132_v42 = vld [vmem:[#allocation13] ss:$0 sm:$0xff] }
 0x4e7   :  { %4495 = vmatpush3.msra.mxu1 %v5759_v41  ;;  %4496 = vmatprep.mubr.msk.f32.mxu1 %vm5118_vm1, %v5117_v13 }
 0x4e8   :  { %4500 = vmatpush3.msra.mxu0 %v5764_v47  ;;  %4501 = vmatprep.mubr.msk.f32.mxu0 %vm5118_vm1, %v5117_v13  ;;  %v2873_v51 = vpop.trf.xlu0 }
 0x4e9   :  { %4504 = vmatprep.subr.mxu1 %v5117_v13  ;;  %v2768_v48 = vpop.trf.xlu1  ;;  %4666 = vmatprep.subr.bf16.mxu0 %v4665_v57 }
 0x4ea   :  { %4497 = vmatmul.mubr.msk.f32.vlgmr.msra.gmra.mrb[36].mxu1 %vm1305_vm2, %v2663_v45  ;;  %4502 = vmatmul.mubr.msk.f32.vlgmr.msra.gmra.mrb[38].mxu0 %vm1305_vm2, %v2768_v48 }
 0x4eb   :  { %4505 = vmatpush3.msra.mxu1 %v5772_v49  ;;  %4506 = vmatprep.mubr.msk.f32.mxu1 %vm5118_vm1, %v5117_v13 }
 0x4ec   :  { %4668 = vmatpush3.bf16.msra.mxu0 %v4665_v57  ;;  %4682 = vmatprep.subr.bf16.mxu1 %v4681_v0 }
 0x4ed   :  { %4670 = vmatprep.subr.bf16.mxu0 %v4669_v58 }
 0x4ee   :  { %4507 = vmatmul.mubr.msk.f32.vlgmr.msra.gmra.mrb[38].mxu1 %vm1305_vm2, %v2873_v51 }
 0x4ef   :  { %4684 = vmatpush3.bf16.msra.mxu1 %v4681_v0 }
 0x4f0   :  { %4672 = vmatpush3.bf16.msra.mxu0 %v4669_v58 }
 0x4f1   :  { %4674 = vmatprep.subr.bf16.mxu0 %v4673_v61 }
 0x58c   :  { %v1607_v2 = vpop.f32.mrb[24].mxu0 }
 0x58d   :  { %v4433_v6 = vpop.f32.mrb[25].mxu0  ;;  %4517 = vmatprep.mubr.msk.f32.mxu0 %vm272_vm0, %v1607_v2 }
 0x590   :  { %v1680_v60 = vpop.f32.mrb[24].mxu1 }
 0x591   :  { %v1753_v18 = vpop.f32.mrb[26].mxu0  ;;  %v4438_v10 = vpop.f32.mrb[25].mxu1  ;;  %4518 = vmatmul.mubr.msk.f32.vlgmr.msra.gmra.mrb[40].mxu0 %vm272_vm0, %v1680_v60 }
 0x592   :  { %v4443_v15 = vpop.f32.mrb[27].mxu0  ;;  %4520 = vmatprep.mubr.msk.f32.mxu0 %vm272_vm0, %v1753_v18  ;;  %4676 = vmatpush3.bf16.msra.mxu0 %v4673_v61 }
 0x593   :  { %4678 = vmatprep.subr.bf16.mxu0 %v4677_v9 }
 0x594   :  { %v1826_v32 = vpop.f32.mrb[26].mxu1 }
 0x595   :  { %v1899_v26 = vpop.f32.mrb[28].mxu0  ;;  %v4448_v44 = vpop.f32.mrb[27].mxu1  ;;  %4521 = vmatmul.mubr.msk.f32.gmra.mrb[42].mxu0 %vm272_vm0, %v1826_v32 }
 0x596   :  { %v4453_v40 = vpop.f32.mrb[29].mxu0  ;;  %4523 = vmatprep.mubr.msk.f32.mxu0 %vm272_vm0, %v1899_v26  ;;  %4680 = vmatpush3.bf16.msra.mxu0 %v4677_v9 }
 0x598   :  { %v1972_v1 = vpop.f32.mrb[28].mxu1 }
 0x599   :  { %v2045_v29 = vpop.f32.mrb[30].mxu0  ;;  %v4458_v38 = vpop.f32.mrb[29].mxu1  ;;  %4524 = vmatmul.mubr.msk.f32.gmra.mrb[44].mxu0 %vm272_vm0, %v1972_v1 }
 0x59a   :  { %v4463_v46 = vpop.f32.mrb[31].mxu0  ;;  %4526 = vmatprep.mubr.msk.f32.mxu0 %vm272_vm0, %v2045_v29 }
 0x59c   :  { %v2118_v16 = vpop.f32.mrb[30].mxu1 }
 0x59d   :  { %v4468_v33 = vpop.f32.mrb[31].mxu1  ;;  %4527 = vmatmul.mubr.msk.f32.gmra.mrb[46].mxu0 %vm272_vm0, %v2118_v16 }
 0x5ac   :  { %v2223_v54 = vpop.f32.mrb[32].mxu0 }
 0x5ad   :  { %4529 = vmatprep.mubr.msk.f32.mxu0 %vm272_vm0, %v2223_v54  ;;  %v4473_v56 = vpop.f32.mrb[33].mxu0 }
 0x5b0   :  { %v2433_v36 = vpop.f32.mrb[34].mxu0 }
 0x5b1   :  { %v4483_v5 = vpop.f32.mrb[35].mxu0 }
 0x5b5   :  { %v2328_v11 = vpop.f32.mrb[32].mxu1 }
 0x5b6   :  { %4530 = vmatmul.mubr.msk.f32.gmra.mrb[48].mxu0 %vm272_vm0, %v2328_v11  ;;  %v4478_v25 = vpop.f32.mrb[33].mxu1 }
 0x5b7   :  { %4532 = vmatprep.mubr.msk.f32.mxu0 %vm272_vm0, %v2433_v36 }
 0x5b9   :  { %v2538_v7 = vpop.f32.mrb[34].mxu1  ;;  %v2643_v19 = vpop.f32.mrb[36].mxu0 }
 0x5ba   :  { %4533 = vmatmul.mubr.msk.f32.gmra.mrb[50].mxu0 %vm272_vm0, %v2538_v7  ;;  %v4488_v50 = vpop.f32.mrb[35].mxu1  ;;  %v4493_v17 = vpop.f32.mrb[37].mxu0 }
 0x5bb   :  { %4535 = vmatprep.mubr.msk.f32.mxu0 %vm272_vm0, %v2643_v19 }
 0x5bd   :  { %v2748_v20 = vpop.f32.mrb[36].mxu1  ;;  %v2853_v12 = vpop.f32.mrb[38].mxu0 }
 0x5be   :  { %4536 = vmatmul.mubr.msk.f32.gmra.mrb[52].mxu0 %vm272_vm0, %v2748_v20  ;;  %v4498_v27 = vpop.f32.mrb[37].mxu1  ;;  %v4503_v21 = vpop.f32.mrb[39].mxu0 }
 0x5bf   :  { %4538 = vmatprep.mubr.msk.f32.mxu0 %vm272_vm0, %v2853_v12  ;;  %v251_v21 = vld [vmem:[#allocation16] sm:$0xff] }
 0x5c1   :  { %v2958_v22 = vpop.f32.mrb[38].mxu1 }
 0x5c2   :  { %4539 = vmatmul.mubr.msk.f32.gmra.mrb[54].mxu0 %vm272_vm0, %v2958_v22  ;;  %v4508_v31 = vpop.f32.mrb[39].mxu1  ;;  %v252_v22 = vld [vmem:[#allocation16 + $0x8] sm:$0xff] }
 0x5c3   :  { %4549 = vmatprep.mubr.msk.f32.mxu0 %vm272_vm0, %v5722_v23  ;;  %v4818_v23 = vld [vmem:[#allocation5] sm:$0xff]  ;;  %v4690_v31 = vpack.c.bf16 %v252_v22, %v251_v21 }
 0x5c6   :  { %4550 = vmatmul.mubr.msk.f32.vlgmr.msra.gmra.mrb[40].mxu0 %vm272_vm0, %v5730_v37  ;;  %v4819_v37 = vld [vmem:[#allocation5 + $0x8] sm:$0xff] }
 0x5c7   :  { %4552 = vmatprep.mubr.msk.f32.mxu0 %vm272_vm0, %v5737_v14  ;;  %v4821_v14 = vld [vmem:[#allocation5 + $0x18] sm:$0xff] }
 0x5ca   :  { %4553 = vmatmul.mubr.msk.f32.gmra.mrb[42].mxu0 %vm272_vm0, %v5751_v52  ;;  %v4685_v52 = vpack.c.bf16 %v245_v34, %v244_v30 }
 0x5cb   :  { %4555 = vmatprep.mubr.msk.f32.mxu0 %vm272_vm0, %v5744_v35  ;;  %v4823_v35 = vld [vmem:[#allocation5 + $0x28] sm:$0xff] }
 0x5cc   :  { %4686 = vmatprep.subr.bf16.mxu1 %v4685_v52 }
 0x5cd   :  { %4688 = vmatpush3.bf16.msra.mxu1 %v4685_v52 }
 0x5ce   :  { %4556 = vmatmul.mubr.msk.f32.gmra.mrb[44].mxu0 %vm272_vm0, %v5759_v41 }
 0x5cf   :  { %4558 = vmatprep.mubr.msk.f32.mxu0 %vm272_vm0, %v5764_v47 }
 0x5d2   :  { %4559 = vmatmul.mubr.msk.f32.gmra.mrb[46].mxu0 %vm272_vm0, %v5772_v49 }
 0x5d3   :  { %4561 = vmatprep.mubr.msk.f32.mxu0 %vm272_vm0, %v4818_v23  ;;  %v5119_v23 = vmov 0.0|0.0  }
 0x5d4   :  { %4689 = vmatprep.subr.bf16.mxu1 %v5119_v23 }
 0x5d6   :  { %4562 = vmatmul.mubr.msk.f32.gmra.mrb[48].mxu0 %vm272_vm0, %v4819_v37  ;;  %v253_v37 = vld [vmem:[#allocation16 + $0x10] sm:$0xff] }
 0x5d7   :  { %4564 = vmatprep.mubr.msk.f32.mxu0 %vm272_vm0, %v4820_v24  ;;  %v254_v24 = vld [vmem:[#allocation16 + $0x18] sm:$0xff] }
 0x5da   :  { %4565 = vmatmul.mubr.msk.f32.gmra.mrb[50].mxu0 %vm272_vm0, %v4821_v14  ;;  %v4693_v14 = vpack.c.bf16 %v254_v24, %v253_v37 }
 0x5db   :  { %4567 = vmatprep.mubr.msk.f32.mxu0 %vm272_vm0, %v4822_v43  ;;  %v5854_v43 = vld [vmem:[%s5959_s10] ss:$0 sm:$0xff] }
 0x5de   :  { %4568 = vmatmul.mubr.msk.f32.gmra.mrb[52].mxu0 %vm272_vm0, %v4823_v35 }
 0x5df   :  { %4570 = vmatprep.mubr.msk.f32.mxu0 %vm272_vm0, %v4824_v28 }
 0x5e2   :  { %4571 = vmatmul.mubr.msk.f32.gmra.mrb[54].mxu0 %vm272_vm0, %v4825_v39 }
 0x699   :  { %v4551_v45 = vpop.f32.mrb[40].mxu0 }
 0x69a   :  { %v3307_v57 = vadd.f32 %v4551_v45, %v4132_v42  ;;  %v3221_v41 = vpop.f32.mrb[41].mxu0 }
 0x69b   :  { %v3306_v47 = vadd.f32 %v4132_v42, %v3221_v41 }
 0x69c   :  { %v3323_v51 = vmax.f32 %v3307_v57, 0.0 }
 0x69d   :  { %v3322_v48 = vmax.f32 %v3306_v47, 0.0  ;;  %v4554_v49 = vpop.f32.mrb[42].mxu0 }
 0x69e   :  { %v3309_v53 = vadd.f32 %v4554_v49, %v4132_v42  ;;  %v3231_v55 = vpop.f32.mrb[43].mxu0 }
 0x69f   :  { %v3308_v58 = vadd.f32 %v4132_v42, %v3231_v55  ;;  %4581 = vmatprep.mubr.msk.f32.mxu1 %vm272_vm0, %v3322_v48 }
 0x6a0   :  { %4582 = vmatmul.mubr.msk.f32.vlgmr.msra.gmra.mrb[40].mxu1 %vm272_vm0, %v3323_v51  ;;  %v3325_v61 = vmax.f32 %v3309_v53, 0.0 }
 0x6a1   :  { %v3324_v59 = vmax.f32 %v3308_v58, 0.0  ;;  %v4557_v8 = vpop.f32.mrb[44].mxu0  ;;  %4691 = vmatpush3.bf16.msra.mxu1 %v4690_v31 }
 0x6a2   :  { %v3311_v62 = vadd.f32 %v4557_v8, %v4132_v42  ;;  %v3241_v63 = vpop.f32.mrb[45].mxu0  ;;  %4692 = vmatprep.subr.bf16.mxu1 %v5119_v23 }
 0x6a3   :  { %v3310_v0 = vadd.f32 %v4132_v42, %v3241_v63  ;;  %4584 = vmatprep.mubr.msk.f32.mxu1 %vm272_vm0, %v3324_v59 }
 0x6a4   :  { %4585 = vmatmul.mubr.msk.f32.gmra.mrb[42].mxu1 %vm272_vm0, %v3325_v61  ;;  %v3327_v4 = vmax.f32 %v3311_v62, 0.0 }
 0x6a5   :  { %v3326_v2 = vmax.f32 %v3310_v0, 0.0  ;;  %v4560_v3 = vpop.f32.mrb[46].mxu0  ;;  %4694 = vmatpush3.bf16.msra.mxu1 %v4693_v14 }
 0x6a6   :  { %v3313_v6 = vadd.f32 %v4560_v3, %v4132_v42  ;;  %v3251_v9 = vpop.f32.mrb[47].mxu0  ;;  %4695 = vmatprep.subr.bf16.mxu1 %v5119_v23 }
 0x6a7   :  { %v3312_v60 = vadd.f32 %v4132_v42, %v3251_v9  ;;  %4587 = vmatprep.mubr.msk.f32.mxu1 %vm272_vm0, %v3326_v2 }
 0x6a8   :  { %4588 = vmatmul.mubr.msk.f32.gmra.mrb[44].mxu1 %vm272_vm0, %v3327_v4  ;;  %v3329_v15 = vmax.f32 %v3313_v6, 0.0 }
 0x6a9   :  { %v3328_v18 = vmax.f32 %v3312_v60, 0.0  ;;  %v4563_v10 = vpop.f32.mrb[48].mxu0 }
 0x6aa   :  { %v3315_v32 = vadd.f32 %v4563_v10, %v4132_v42  ;;  %v3261_v26 = vpop.f32.mrb[49].mxu0 }
 0x6ab   :  { %v3314_v44 = vadd.f32 %v4132_v42, %v3261_v26  ;;  %4590 = vmatprep.mubr.msk.f32.mxu1 %vm272_vm0, %v3328_v18 }
 0x6ac   :  { %4591 = vmatmul.mubr.msk.f32.gmra.mrb[46].mxu1 %vm272_vm0, %v3329_v15  ;;  %v3331_v29 = vmax.f32 %v3315_v32, 0.0 }
 0x6ad   :  { %v3330_v40 = vmax.f32 %v3314_v44, 0.0  ;;  %v4566_v1 = vpop.f32.mrb[50].mxu0 }
 0x6ae   :  { %v3317_v38 = vadd.f32 %v4566_v1, %v4132_v42  ;;  %v3271_v46 = vpop.f32.mrb[51].mxu0 }
 0x6af   :  { %v3316_v16 = vadd.f32 %v4132_v42, %v3271_v46  ;;  %4593 = vmatprep.mubr.msk.f32.mxu1 %vm272_vm0, %v3330_v40 }
 0x6b0   :  { %4594 = vmatmul.mubr.msk.f32.gmra.mrb[48].mxu1 %vm272_vm0, %v3331_v29  ;;  %v3333_v56 = vmax.f32 %v3317_v38, 0.0 }
 0x6b1   :  { %v3332_v33 = vmax.f32 %v3316_v16, 0.0  ;;  %v4569_v54 = vpop.f32.mrb[52].mxu0 }
 0x6b2   :  { %v3319_v36 = vadd.f32 %v4569_v54, %v4132_v42  ;;  %v3281_v5 = vpop.f32.mrb[53].mxu0 }
 0x6b3   :  { %v3318_v11 = vadd.f32 %v4132_v42, %v3281_v5  ;;  %4596 = vmatprep.mubr.msk.f32.mxu1 %vm272_vm0, %v3332_v33 }
 0x6b4   :  { %4597 = vmatmul.mubr.msk.f32.gmra.mrb[50].mxu1 %vm272_vm0, %v3333_v56  ;;  %v3335_v19 = vmax.f32 %v3319_v36, 0.0 }
 0x6b5   :  { %v3334_v25 = vmax.f32 %v3318_v11, 0.0  ;;  %v4572_v7 = vpop.f32.mrb[54].mxu0 }
 0x6b6   :  { %v3321_v50 = vadd.f32 %v4572_v7, %v4132_v42  ;;  %v3291_v17 = vpop.f32.mrb[55].mxu0 }
 0x6b7   :  { %v3320_v20 = vadd.f32 %v4132_v42, %v3291_v17  ;;  %4599 = vmatprep.mubr.msk.f32.mxu1 %vm272_vm0, %v3334_v25 }
 0x6b8   :  { %4600 = vmatmul.mubr.msk.f32.gmra.mrb[52].mxu1 %vm272_vm0, %v3335_v19  ;;  %v3337_v27 = vmax.f32 %v3321_v50, 0.0 }
 0x6b9   :  { %v3336_v12 = vmax.f32 %v3320_v20, 0.0 }
 0x6bb   :  { %4602 = vmatprep.mubr.msk.f32.mxu1 %vm272_vm0, %v3336_v12 }
 0x6bc   :  { %4603 = vmatmul.mubr.msk.f32.gmra.mrb[54].mxu1 %vm272_vm0, %v3337_v27 }
 0x6bd   :  { %4613 = vmatprep.mubr.msk.f32.mxu1 %vm5118_vm1, %v5117_v13 }
 0x773   :  { %v4583_v35 = vpop.f32.mrb[40].mxu1 }
 0x774   :  { %v3464_v28 = vadd.f32 %v4583_v35, %v5854_v43  ;;  %v3458_v39 = vpop.f32.mrb[41].mxu1 }
 0x775   :  { %v3459_v30 = vadd.f32 %v5854_v43, %v3458_v39 }
 0x776   :  { %v3538_v34 = vmax.f32 %v3464_v28, 0.0 }
 0x777   :  { %v3537_v52 = vmax.f32 %v3459_v30, 0.0  ;;  %v4586_v42 = vpop.f32.mrb[42].mxu1 }
 0x778   :  { %v3560_v45 = vsel %vm272_vm0, %v3538_v34, 0.0  ;;  %v3474_v57 = vadd.f32 %v4586_v42, %v5854_v43  ;;  %v3468_v41 = vpop.f32.mrb[43].mxu1 }
 0x779   :  { %v3561_v47 = vrot.slane %v3560_v45, 4  ;;  %v3553_v48 = vsel %vm272_vm0, %v3537_v52, 0.0  ;;  %v3469_v49 = vadd.f32 %v5854_v43, %v3468_v41 }
 0x77a   :  { %v3554_v51 = vrot.slane %v3553_v48, 4  ;;  %v3540_v53 = vmax.f32 %v3474_v57, 0.0 }
 0x77b   :  { %v3562_v55 = vadd.f32 %v3561_v47, %v3560_v45  ;;  %v3539_v58 = vmax.f32 %v3469_v49, 0.0  ;;  %v4589_v59 = vpop.f32.mrb[44].mxu1 }
 0x77c   :  { %v3555_v8 = vadd.f32 %v3554_v51, %v3553_v48  ;;  %v3574_v61 = vsel %vm272_vm0, %v3540_v53, 0.0  ;;  %v3484_v62 = vadd.f32 %v4589_v59, %v5854_v43  ;;  %v3478_v63 = vpop.f32.mrb[45].mxu1 }
 0x77d   :  { %v3563_v0 = vrot.slane %v3562_v55, 2  ;;  %v3575_v2 = vrot.slane %v3574_v61, 4  ;;  %v3567_v3 = vsel %vm272_vm0, %v3539_v58, 0.0  ;;  %v3479_v4 = vadd.f32 %v5854_v43, %v3478_v63 }
 0x77e   :  { %v3556_v6 = vrot.slane %v3555_v8, 2  ;;  %v3568_v9 = vrot.slane %v3567_v3, 4  ;;  %v3542_v60 = vmax.f32 %v3484_v62, 0.0 }
 0x77f   :  { %v3564_v18 = vadd.f32 %v3563_v0, %v3562_v55  ;;  %v3576_v10 = vadd.f32 %v3575_v2, %v3574_v61  ;;  %v3541_v15 = vmax.f32 %v3479_v4, 0.0  ;;  %v4592_v32 = vpop.f32.mrb[46].mxu1 }
 0x780   :  { %v3557_v26 = vadd.f32 %v3556_v6, %v3555_v8  ;;  %v3569_v44 = vadd.f32 %v3568_v9, %v3567_v3  ;;  %v3588_v40 = vsel %vm272_vm0, %v3542_v60, 0.0  ;;  %v3494_v1 = vadd.f32 %v4592_v32, %v5854_v43  ;;  %v3488_v29 = vpop.f32.mrb[47].mxu1 }
 0x781   :  { %v3565_v38 = vrot.slane %v3564_v18, 1  ;;  %v3577_v46 = vrot.slane %v3576_v10, 2  ;;  %v3589_v16 = vrot.slane %v3588_v40, 4  ;;  %v3581_v33 = vsel %vm272_vm0, %v3541_v15, 0.0 }
 0x782   :  { %v3558_v54 = vrot.slane %v3557_v26, 1  ;;  %v3570_v56 = vrot.slane %v3569_v44, 2  ;;  %v3582_v36 = vrot.slane %v3581_v33, 4  ;;  %v3544_v5 = vmax.f32 %v3494_v1, 0.0 }
 0x783   :  { %v3566_v11 = vadd.f32 %v3565_v38, %v3564_v18  ;;  %v3578_v25 = vadd.f32 %v3577_v46, %v3576_v10  ;;  %v3590_v7 = vadd.f32 %v3589_v16, %v3588_v40  ;;  %v3489_v19 = vadd.f32 %v5854_v43, %v3488_v29  ;;  %v4595_v50 = vpop.f32.mrb[48].mxu1 }
 0x784   :  { %v3559_v17 = vadd.f32 %v3558_v54, %v3557_v26  ;;  %v3571_v20 = vadd.f32 %v3570_v56, %v3569_v44  ;;  %v3583_v12 = vadd.f32 %v3582_v36, %v3581_v33  ;;  %v3602_v27 = vsel %vm272_vm0, %v3544_v5, 0.0  ;;  %v3498_v21 = vpop.f32.mrb[49].mxu1 }
 0x785   :  { %v3591_v22 = vrot.slane %v3590_v7, 2  ;;  %v3603_v31 = vrot.slane %v3602_v27, 4  ;;  %v3543_v37 = vmax.f32 %v3489_v19, 0.0  ;;  %v3504_v28 = vadd.f32 %v4595_v50, %v5854_v43 }
 0x786   :  { %v3767_v24 = vsel %vm3673_vm3, %v3566_v11, %v3559_v17  ;;  %v3572_v14 = vrot.slane %v3571_v20, 1  ;;  %v3584_v35 = vrot.slane %v3583_v12, 2  ;;  %v3579_v39 = vrot.slane %v3578_v25, 1 }
 0x787   :  { %v5873_v30 = vadd.f32 %v3591_v22, %v3590_v7  ;;  %v3604_v34 = vadd.f32 %v3603_v31, %v3602_v27  ;;  %v3595_v52 = vsel %vm272_vm0, %v3543_v37, 0.0  ;;  %v4598_v42 = vpop.f32.mrb[50].mxu1  ;;  %v3546_v47 = vmax.f32 %v3504_v28, 0.0 }
 0x788   :  { %v3573_v45 = vadd.f32 %v3572_v14, %v3571_v20  ;;  %v3585_v57 = vadd.f32 %v3584_v35, %v3583_v12  ;;  %v3596_v41 = vrot.slane %v3595_v52, 4  ;;  %v3508_v48 = vpop.f32.mrb[51].mxu1  ;;  %v3499_v51 = vadd.f32 %v5854_v43, %v3498_v21 }
 0x789   :  { %v3605_v49 = vrot.slane %v3604_v34, 2  ;;  %v3514_v53 = vadd.f32 %v4598_v42, %v5854_v43  ;;  %v3616_v8 = vsel %vm272_vm0, %v3546_v47, 0.0  ;;  %v3580_v61 = vadd.f32 %v3579_v39, %v3578_v25 }
 0x78a   :  { %v5879_v55 = vsel %vm3675_vm4, %v3573_v45, %v3767_v24  ;;  %v3586_v58 = vrot.slane %v3585_v57, 1  ;;  %v3597_v59 = vadd.f32 %v3596_v41, %v3595_v52  ;;  %v3617_v63 = vrot.slane %v3616_v8, 4 }
 0x78b   :  { %v5882_v62 = vadd.f32 %v3605_v49, %v3604_v34  ;;  %v3545_v0 = vmax.f32 %v3499_v51, 0.0  ;;  %v4601_v2 = vpop.f32.mrb[52].mxu1  ;;  %v3593_v3 = vrot.slane %v5873_v30, 1  ;;  %v3548_v6 = vmax.f32 %v3514_v53, 0.0 }
 0x78c   :  { %v3598_v4 = vrot.slane %v3597_v59, 2  ;;  %v3509_v9 = vadd.f32 %v5854_v43, %v3508_v48  ;;  %v3518_v60 = vpop.f32.mrb[53].mxu1  ;;  %v3587_v18 = vadd.f32 %v3586_v58, %v3585_v57  ;;  %v3618_v10 = vadd.f32 %v3617_v63, %v3616_v8 }
 0x78d   :  { %v3609_v15 = vsel %vm272_vm0, %v3545_v0, 0.0  ;;  %v3524_v32 = vadd.f32 %v4601_v2, %v5854_v43  ;;  %v3630_v40 = vsel %vm272_vm0, %v3548_v6, 0.0  ;;  %v3607_v29 = vrot.slane %v5882_v62, 1 }
 0x78e   :  { %v3599_v26 = vadd.f32 %v3598_v4, %v3597_v59  ;;  %v3610_v44 = vrot.slane %v3609_v15, 4  ;;  %v3547_v1 = vmax.f32 %v3509_v9, 0.0  ;;  %v3619_v38 = vrot.slane %v3618_v10, 2 }
 0x78f   :  { %v3631_v46 = vrot.slane %v3630_v40, 4  ;;  %v3550_v16 = vmax.f32 %v3524_v32, 0.0  ;;  %v4604_v33 = vpop.f32.mrb[54].mxu1  ;;  %v3519_v5 = vadd.f32 %v5854_v43, %v3518_v60  ;;  %v3769_v53 = vsel %vm3677_vm5, %v3580_v61, %v5879_v55 }
 0x790   :  { %v3600_v54 = vrot.slane %v3599_v26, 1  ;;  %v3611_v56 = vadd.f32 %v3610_v44, %v3609_v15  ;;  %v3623_v36 = vsel %vm272_vm0, %v3547_v1, 0.0  ;;  %v3528_v11 = vpop.f32.mrb[55].mxu1  ;;  %v3620_v25 = vadd.f32 %v3619_v38, %v3618_v10 }
 0x791   :  { %v3632_v7 = vadd.f32 %v3631_v46, %v3630_v40  ;;  %v3624_v19 = vrot.slane %v3623_v36, 4  ;;  %v3644_v50 = vsel %vm272_vm0, %v3550_v16, 0.0  ;;  %v3549_v27 = vmax.f32 %v3519_v5, 0.0 }
 0x792   :  { %v3601_v17 = vadd.f32 %v3600_v54, %v3599_v26  ;;  %v3612_v20 = vrot.slane %v3611_v56, 2  ;;  %v3645_v12 = vrot.slane %v3644_v50, 4  ;;  %v3621_v21 = vrot.slane %v3620_v25, 1 }
 0x793   :  { %v3633_v22 = vrot.slane %v3632_v7, 2  ;;  %v3625_v31 = vadd.f32 %v3624_v19, %v3623_v36  ;;  %v3534_v37 = vadd.f32 %v4604_v33, %v5854_v43  ;;  %v3637_v35 = vsel %vm272_vm0, %v3549_v27, 0.0  ;;  %v250_v27 = vld [vmem:[#allocation14 + $0x18] sm:$0xff] }
 0x794   :  { %v3613_v24 = vadd.f32 %v3612_v20, %v3611_v56  ;;  %v3646_v14 = vadd.f32 %v3645_v12, %v3644_v50  ;;  %v3529_v28 = vadd.f32 %v5854_v43, %v3528_v11  ;;  %v3622_v39 = vadd.f32 %v3621_v21, %v3620_v25  ;;  %v247_v25 = vld [vmem:[#allocation14] sm:$0xff]  ;;  %v249_v12 = vld [vmem:[#allocation14 + $0x10] sm:$0xff] }
 0x795   :  { %v3634_v34 = vadd.f32 %v3633_v22, %v3632_v7  ;;  %v3626_v52 = vrot.slane %v3625_v31, 2  ;;  %v3638_v42 = vrot.slane %v3637_v35, 4  ;;  %v3552_v41 = vmax.f32 %v3534_v37, 0.0  ;;  %v248_v7 = vld [vmem:[#allocation14 + $0x8] sm:$0xff] }
 0x796   :  { %v3614_v45 = vrot.slane %v3613_v24, 1  ;;  %v3647_v57 = vrot.slane %v3646_v14, 2  ;;  %v3551_v47 = vmax.f32 %v3529_v28, 0.0  ;;  %v3594_v63 = vadd.f32 %v3593_v3, %v5873_v30  ;;  %v257_v37 = vld [vmem:[#allocation17 + $0x8] sm:$0xff] }
 0x797   :  { %v3635_v48 = vrot.slane %v3634_v34, 1  ;;  %v3627_v49 = vadd.f32 %v3626_v52, %v3625_v31  ;;  %v3639_v51 = vadd.f32 %v3638_v42, %v3637_v35  ;;  %v3658_v8 = vsel %vm272_vm0, %v3552_v41, 0.0  ;;  %v256_v31 = vld [vmem:[#allocation17] sm:$0xff]  ;;  %v259_v35 = vld [vmem:[#allocation17 + $0x18] sm:$0xff] }
 0x798   :  { %v3615_v58 = vadd.f32 %v3614_v45, %v3613_v24  ;;  %v3648_v59 = vadd.f32 %v3647_v57, %v3646_v14  ;;  %v3651_v43 = vsel %vm272_vm0, %v3551_v47, 0.0  ;;  %v3659_v4 = vrot.slane %v3658_v8, 4  ;;  %v258_v14 = vld [vmem:[#allocation17 + $0x10] sm:$0xff]  ;;  %v4152_v52 = vld [vmem:[%s5962_s13] ss:$0 sm:$0xff]  ;;  %v261_v41 = vld [vmem:[#allocation19] sm:$0xff] }
 0x799   :  { %v3628_v0 = vrot.slane %v3627_v49, 1  ;;  %v3640_v2 = vrot.slane %v3639_v51, 2  ;;  %v3608_v6 = vadd.f32 %v3607_v29, %v5882_v62  ;;  %v3652_v60 = vrot.slane %v3651_v43, 4  ;;  %v262_v47 = vld [vmem:[#allocation19 + $0x8] sm:$0xff] }
 0x79a   :  { %v3674_v9 = vsel %vm3673_vm3, %v3622_v39, %v3615_v58  ;;  %v3770_v10 = vsel %vm3679_vm6, %v3587_v18, %v3769_v53  ;;  %v3660_v61 = vadd.f32 %v3659_v4, %v3658_v8  ;;  %v3636_v26 = vadd.f32 %v3635_v48, %v3634_v34  ;;  %v263_v53 = vld [vmem:[#allocation19 + $0x10] sm:$0xff]  ;;  %v264_v58 = vld [vmem:[#allocation19 + $0x18] sm:$0xff] }
 0x79b   :  { %v3629_v15 = vadd.f32 %v3628_v0, %v3627_v49  ;;  %v3641_v55 = vadd.f32 %v3640_v2, %v3639_v51  ;;  %v3771_v32 = vsel %vm3681_vm7, %v3594_v63, %v3770_v10  ;;  %v3649_v44 = vrot.slane %v3648_v59, 1  ;;  %v4153_v8 = vld [vmem:[%s5964_s15] ss:$0 sm:$0xff] }
 0x79c   :  { %v3653_v40 = vadd.f32 %v3652_v60, %v3651_v43  ;;  %v3772_v30 = vsel %vm3683_vm8, %v3601_v17, %v3771_v32  ;;  %v3661_v38 = vrot.slane %v3660_v61, 2  ;;  %v4696_v17 = vpack.c.bf16 %v248_v7, %v247_v25 }
 0x79d   :  { %v3676_v3 = vsel %vm3675_vm4, %v3629_v15, %v3674_v9  ;;  %v3642_v1 = vrot.slane %v3641_v55, 1  ;;  %v3773_v62 = vsel %vm3685_vm9, %v3608_v6, %v3772_v30  ;;  %v3650_v33 = vadd.f32 %v3649_v44, %v3648_v59 }
 0x79e   :  { %v3678_v29 = vsel %vm3677_vm5, %v3636_v26, %v3676_v3  ;;  %v3654_v46 = vrot.slane %v3653_v40, 2  ;;  %v3662_v16 = vadd.f32 %v3661_v38, %v3660_v61  ;;  %v4699_v22 = vpack.c.bf16 %v250_v27, %v249_v12 }
 0x79f   :  { %v3643_v18 = vadd.f32 %v3642_v1, %v3641_v55  ;;  %v4702_v24 = vpack.c.bf16 %v257_v37, %v256_v31  ;;  %v4705_v28 = vpack.c.bf16 %v259_v35, %v258_v14  ;;  %v4708_v49 = vpack.c.bf16 %v262_v47, %v261_v41 }
 0x7a0   :  { %v3655_v54 = vadd.f32 %v3654_v46, %v3653_v40  ;;  %v3663_v36 = vrot.slane %v3662_v16, 1  ;;  %v4711_v59 = vpack.c.bf16 %v264_v58, %v263_v53 }
 0x7a1   :  { %v3680_v56 = vsel %vm3679_vm6, %v3643_v18, %v3678_v29 }
 0x7a2   :  { %v3656_v5 = vrot.slane %v3655_v54, 1  ;;  %v3682_v11 = vsel %vm3681_vm7, %v3650_v33, %v3680_v56  ;;  %v3664_v50 = vadd.f32 %v3663_v36, %v3662_v16 }
 0x7a4   :  { %v3657_v19 = vadd.f32 %v3656_v5, %v3655_v54 }
 0x7a6   :  { %v3684_v20 = vsel %vm3683_vm8, %v3657_v19, %v3682_v11 }
 0x7a7   :  { %v3686_v21 = vsel %vm3685_vm9, %v3664_v50, %v3684_v20 }
 0x7a8   :  { %4614 = vmatmul.mubr.msk.f32.vlgmr.msra.gmra.mrb[56].mxu1 %vm272_vm0, %v3686_v21 }
 0x7a9   :  { %4697 = vmatpush3.bf16.msra.mxu1 %v4696_v17  ;;  %4624 = vmatprep.mubr.msk.f32.mxu1 %vm5118_vm1, %v5117_v13 }
 0x7aa   :  { %4698 = vmatprep.subr.bf16.mxu1 %v5119_v23 }
 0x7ad   :  { %4700 = vmatpush3.bf16.msra.mxu1 %v4699_v22 }
 0x7ae   :  { %4701 = vmatprep.subr.bf16.mxu1 %v5119_v23 }
 0x7b0   :  { %4625 = vmatmul.mubr.msk.f32.vlgmr.msra.gmra.mrb[58].mxu1 %vm272_vm0, %v3773_v62 }
 0x7b1   :  { %4635 = vmatprep.mubr.msk.f32.mxu1 %vm5118_vm1, %v5117_v13  ;;  %4703 = vmatpush3.bf16.msra.mxu1 %v4702_v24 }
 0x7b2   :  { %4704 = vmatprep.subr.bf16.mxu1 %v5119_v23 }
 0x7b5   :  { %4706 = vmatpush3.bf16.msra.mxu1 %v4705_v28 }
 0x7b6   :  { %4707 = vmatprep.subr.bf16.mxu1 %v5119_v23 }
 0x87b   :  { %v3755_v39 = vpop.f32.mrb[56].mxu1 }
 0x87c   :  { %v4615_v34 = vpop.f32.mrb[57].mxu1 }
 0x883   :  { %v3842_v42 = vpop.f32.mrb[58].mxu1 }
 0x884   :  { %v3843_v45 = vadd.f32 %v3842_v42, %v3755_v39  ;;  %v4626_v57 = vpop.f32.mrb[59].mxu1 }
 0x886   :  { %v3852_v48 = vadd.f32 %v4152_v52, %v3843_v45 }
 0x888   :  { %v3853_v51 = vmax.f32 %v3852_v48, 0.0 }
 0x88a   :  { %4636 = vmatmul.mubr.msk.f32.vlgmr.msra.gmra.mrb[60].mxu1 %vm272_vm0, %v3853_v51 }
 0x88b   :  { %4709 = vmatpush3.bf16.msra.mxu1 %v4708_v49  ;;  %4646 = vmatprep.mubr.msk.f32.mxu1 %vm5118_vm1, %v5117_v13  ;;  %v4155_v13 = vld [vmem:[%s5966_s17] ss:$0 sm:$0xff] }
 0x88c   :  { %4710 = vmatprep.subr.bf16.mxu1 %v5119_v23 }
 0x88f   :  { %4712 = vmatpush3.bf16.msra.mxu1 %v4711_v59 }
 0x95d   :  { %v3929_v43 = vpop.f32.mrb[60].mxu1 }
 0x95e   :  { %v3930_v63 = vadd.f32 %v4153_v8, %v3929_v43  ;;  %v4637_v0 = vpop.f32.mrb[61].mxu1 }
 0x960   :  { %v3933_v2 = vmax.f32 %v3930_v63, 0.0 }
 0x962   :  { %4647 = vmatmul.mubr.msk.f32.vlgmr.msra.gmra.mrb[62].mxu1 %vm272_vm0, %v3933_v2 }
 0xa35   :  { %v4009_v23 = vpop.f32.mrb[62].mxu1 }
 0xa36   :  { %v4010_v4 = vadd.f32 %v4155_v13, %v4009_v23  ;;  %v4648_v6 = vpop.f32.mrb[63].mxu1 }
 0xa38   :  { %4013 = vst [vmem:[#allocation20] sm:$0xff] %v4010_v4 }
 0xa39   :  { %5079 = shalt.err (!%p5076_p8)
}
 0xa3a   :  { %s5979_s21 = sld [smem:[#allocation31_spill]] }
 0xa40   :  { %s5080_s19 = scalar_lea.hbm %s5979_s21, 128 }
 0xa41   :  { %p5081_p9 = scmp.ne.s32.totalorder %s5979_s21, %s5080_s19  ;;  %p5084_p10 = scmp.lt.u32.totalorder %s5080_s19, %s5979_s21 }
 0xa43   :  { %p5086_p11 = pnand %p5084_p10, %p5081_p9 }
 0xa45   :  { %5089 = shalt.err (!%p5086_p11)
}
 0xa46   :  { %4023 = dma.vmem_to_hbm [thread:$0]  %s4021_s0, 128, %s5979_s21, [#allocation4]  }
 0xa47   :  { %5102 = dma.done.wait [#allocation4], 128  }
 0xa48   :  { %5103 = vsyncadd [#allocation4], 4294967168 }
 0xa49   :  { %4027 = vsyncpa [#allocation3], 1 }
 0xa4a   :  { %4028 = vsyncpa [#allocation6], 1 }
 0xa4b   :  { %4029 = vsyncpa [#allocation9], 1 }
 0xa4c   :  { %4030 = vsyncpa [#allocation12], 1 }
 0xa4d   :  { %4031 = vsyncpa [#allocation15], 1 }
 0xa4e   :  { %4032 = vsyncpa [#allocation18], 1 }
 0xa4f   :  { %4033 = vsyncpa [#allocation4], 1 }

</bundles_post_ra>
